<compile_context>
chip_gen: v7x
topology: tpu7x:2x2x1
jax: 0.10.0
libtpu: 0.0.40
codegen_flags: <defaults>
</compile_context>

<pallas_src>
import functools
import jax
import jax.numpy as jnp
from jax.experimental import pallas as pl
from jax.experimental.pallas import tpu as pltpu


def _round_up(x, m):
    return ((x + m - 1) // m) * m


def _pad2d(x, rows, cols):
    out = jnp.zeros((rows, cols), jnp.float32)
    return out.at[:x.shape[0], :x.shape[1]].set(x.astype(jnp.float32))


# ----------------------------------------------------------------------------
# The single fused RebQ kernel.
#   stage A: memory prompt pools (all layers folded into the lane axis)
#   stage B: text/image query routing by missing_types (ViLT-2 stub)
#   stage C: text + image prompt pools (layers folded, Ek/Ev reduction baked
#            into the pm operands at init)
#   stage D: pooler (Linear+Tanh) -> Linear -> LayerNorm -> GELU -> Linear
# All operands are (rows, 128*k) lane-padded f32 tiles resident in VMEM.
# ----------------------------------------------------------------------------
def _rebq_kernel(n_ln,
                 qmem_ref, wn_m_ref, wd_m_ref, pm_m_ref,
                 sel_t_ref, sel_i_ref, use_ot_ref, use_oi_ref,
                 v2cls_ref, v2img_ref,
                 wn_t_ref, wd_t_ref, pm_t_ref,
                 wn_i_ref, wd_i_ref, pm_i_ref,
                 v3cls_ref,
                 pwT_ref, pb_ref, w1T_ref, b1_ref, g_ref, be_ref,
                 w2T_ref, b2_ref,
                 out_ref):
    f32 = jnp.float32

    def pool(q, wn, wd, pm):
        # aq_k = (x . (A*n_K)) * rsqrt(max(||x*A||^2, 1e-24));  padded lanes of
        # num/den are exactly zero -> aq = 0 there -> no spurious contribution.
        num = jnp.dot(q, wn, preferred_element_type=f32)
        den = jnp.dot(q * q, wd, preferred_element_type=f32)
        aq = num * jax.lax.rsqrt(jnp.maximum(den, 1e-24))
        return jnp.dot(aq, pm, preferred_element_type=f32)

    qm = qmem_ref[...]                                   # (2*Bp, Dp)
    bp = qm.shape[0] // 2

    # ---- stage A: memory prompt pools -------------------------------------
    eff_mem = pool(qm, wn_m_ref[...], wd_m_ref[...], pm_m_ref[...])
    # 0 -> text+image, 1/3 -> image only, else text only
    mem_eff = sel_t_ref[...] * eff_mem[:bp] + sel_i_ref[...] * eff_mem[bp:]

    # ---- stage B: text / image query routing ------------------------------
    # TODO(synk): second ViLT pass is the external backbone; memory prompts are
    #             folded additively onto its stubbed hidden states.
    o_t = v2cls_ref[...] + 0.01 * mem_eff
    o_i = v2img_ref[...] + 0.01 * mem_eff
    use_ot = use_ot_ref[...]
    use_oi = use_oi_ref[...]
    text_q = use_ot * o_t + (1.0 - use_ot) * qm[:bp]
    img_q = use_oi * o_i + (1.0 - use_oi) * qm[bp:]

    # ---- stage C: text + image prompt pools --------------------------------
    eff_ti = (pool(text_q, wn_t_ref[...], wd_t_ref[...], pm_t_ref[...]) +
              pool(img_q, wn_i_ref[...], wd_i_ref[...], pm_i_ref[...]))

    # ---- stage D: pooler + MLP classifier ----------------------------------
    # TODO(synk): third ViLT pass stubbed; prompts folded in additively.
    cls = v3cls_ref[...] + 0.01 * eff_ti
    pooled = jnp.tanh(jnp.dot(cls, pwT_ref[...], preferred_element_type=f32)
                      + pb_ref[...])
    h = jnp.dot(pooled, w1T_ref[...], preferred_element_type=f32) + b1_ref[...]
    # LayerNorm over the first n_ln (=2H) features.  Padded lanes of h are
    # exactly zero (zero weight columns + zero bias pad), so full-lane sums
    # divided by n_ln are exact; gamma/beta are zero-padded so the padded
    # lanes stay zero afterwards.
    inv_n = 1.0 / n_ln
    mu = jnp.sum(h, axis=-1, keepdims=True) * inv_n
    var = jnp.maximum(jnp.sum(h * h, axis=-1, keepdims=True) * inv_n - mu * mu, 0.0)
    hn = (h - mu) * jax.lax.rsqrt(var + 1e-5) * g_ref[...] + be_ref[...]
    # exact GELU (PyTorch nn.GELU default)
    a = 0.5 * hn * (1.0 + jax.lax.erf(hn * 0.7071067811865476))
    out_ref[...] = jnp.dot(a, w2T_ref[...], preferred_element_type=f32) + b2_ref[...]


# ----------------------------------------------------------------------------
# Deterministic parameter initialization (mirrors tensor_prompt + gram_schmidt
# semantics: uniform init with the first task-slice rows replaced by a
# deterministic orthonormal set).
# ----------------------------------------------------------------------------
def init_prompt_pool(key, *, layers, pool_size, length, emb_d, key_d, n_tasks):
    pt = pool_size // n_tasks
    params = []
    for _ in range(layers):
        key, k1, k2, k3, k4, k5, k6 = jax.random.split(key, 7)
        p = jax.random.uniform(k1, (pool_size, length, emb_d), jnp.float32)
        K = jax.random.uniform(k2, (pool_size, key_d), jnp.float32)
        A = jax.random.uniform(k3, (pool_size, key_d), jnp.float32)

        p2 = p.reshape(pool_size, -1)
        qp, _ = jnp.linalg.qr(jax.random.normal(k4, (length * emb_d, pt), jnp.float32))
        p = p2.at[:pt].set(qp.T).reshape(pool_size, length, emb_d)
        qk, _ = jnp.linalg.qr(jax.random.normal(k5, (key_d, pt), jnp.float32))
        K = K.at[:pt].set(qk.T)
        qa, _ = jnp.linalg.qr(jax.random.normal(k6, (key_d, pt), jnp.float32))
        A = A.at[:pt].set(qa.T)
        params.append({"p": p, "K": K, "A": A})
    return params, key


def init_head(key, hidden, total_labels):
    key, k1, k2, k3 = jax.random.split(key, 4)
    return {
        "pw": 0.1 * jax.random.normal(k1, (hidden, hidden), jnp.float32),
        "pb": jnp.zeros((hidden,), jnp.float32),
        "w1": 0.1 * jax.random.normal(k2, (2 * hidden, hidden), jnp.float32),
        "b1": jnp.zeros((2 * hidden,), jnp.float32),
        "gamma": jnp.ones((2 * hidden,), jnp.float32),
        "beta": jnp.zeros((2 * hidden,), jnp.float32),
        "w2": 0.1 * jax.random.normal(k3, (total_labels, 2 * hidden), jnp.float32),
        "b2": jnp.zeros((total_labels,), jnp.float32),
    }, key


# ----------------------------------------------------------------------------
# Hoisted parameter-only preprocessing (done once at init, not per forward).
# ----------------------------------------------------------------------------
def precompute_pool_group(layer_params, *, task_count, pool_size, n_tasks,
                          length, half_split, dp):
    """Fold every layer of a PromptPool group (eval-mode slice [:f]) into three
    lane-padded operands:
      wn (dp, kp): columns [(A_l * n_K_l)^T for each layer l]  (num matmul)
      wd (dp, kp): columns [(A_l * A_l)^T   for each layer l]  (den matmul)
      pm (kp, dp): rows    [length-reduced prompts per layer]  (fused epilogue)
    half_split=False -> mean over the full prompt length (memory prompts)
    half_split=True  -> mean(Ek) + mean(Ev)              (attention prompts)
    """
    pt = pool_size // n_tasks
    f = (task_count + 1) * pt
    wn_cols, wd_cols, pm_rows = [], [], []
    for lp in layer_params:
        K, A, p = lp["K"][:f], lp["A"][:f], lp["p"][:f]
        n_K = K / jnp.maximum(
            jnp.sqrt(jnp.sum(K * K, axis=1, keepdims=True)), 1e-12)
        wn_cols.append((A * n_K).T)                       # (key_d, f)
        wd_cols.append((A * A).T)                         # (key_d, f)
        if half_split:
            h = length // 2
            pm_rows.append(p[:, :h].mean(axis=1) + p[:, h:].mean(axis=1))
        else:
            pm_rows.append(p.mean(axis=1))                # (f, emb_d)
    wn = jnp.concatenate(wn_cols, axis=1)
    wd = jnp.concatenate(wd_cols, axis=1)
    pm = jnp.concatenate(pm_rows, axis=0)
    kp = max(128, _round_up(wn.shape[1], 128))
    return _pad2d(wn, dp, kp), _pad2d(wd, dp, kp), _pad2d(pm, kp, dp)


def precompute_head(head_params, *, dp):
    h2 = head_params["w1"].shape[0]
    n_labels = head_params["w2"].shape[0]
    h2p = max(128, _round_up(h2, 128))
    n_pad = max(128, _round_up(n_labels, 128))
    return {
        "pwT": _pad2d(head_params["pw"].T, dp, dp),
        "pb": _pad2d(head_params["pb"][None, :], 1, dp),
        "w1T": _pad2d(head_params["w1"].T, dp, h2p),
        "b1": _pad2d(head_params["b1"][None, :], 1, h2p),
        # gamma/beta zero-padded so padded LayerNorm lanes stay exactly zero
        "gamma": _pad2d(head_params["gamma"][None, :], 1, h2p),
        "beta": _pad2d(head_params["beta"][None, :], 1, h2p),
        "w2T": _pad2d(head_params["w2"].T, h2p, n_pad),
        "b2": _pad2d(head_params["b2"][None, :], 1, n_pad),
    }


# ----------------------------------------------------------------------------
# RebQ forward (eval mode, num_aug = 0).  Jitted by the caller; dispatches a
# single pallas_call.
# ----------------------------------------------------------------------------
def rebq_forward(params, queries, vilt2_base, vilt3_base, missing_types, labels,
                 *, cfg, num_aug):
    H = cfg["HIDDEN_SIZE"]
    mem_len = cfg["MEM_LENGTH"]
    text_len = cfg["TEXT_LEN"]
    B_total = queries.shape[0]
    B_orig = B_total - num_aug

    f32 = jnp.float32
    head = params["head"]
    Dp = params["wn_mem"].shape[0]
    Np = head["w2T"].shape[1]
    Bp = max(8, _round_up(B_total, 8))       # sublane-pad the batch to >= 8

    queries = queries.astype(f32)

    def pad_feat(x, rows):                   # (n, H) -> (rows, Dp), zero padded
        return jnp.zeros((rows, Dp), f32).at[:x.shape[0], :H].set(x)

    def row_mask(vals, n_valid):             # (n_valid,) -> (Bp, Dp) broadcast
        col = jnp.zeros((Bp,), f32).at[:n_valid].set(vals.astype(f32))
        return jnp.broadcast_to(col[:, None], (Bp, Dp))

    # TODO(synk): first ViLT pass (frozen, torch.no_grad) is stubbed; `queries`
    #             stands in for its last_hidden_state.
    t_q = queries[:, 0, :]
    i_q = queries[:, text_len, :]
    q_mem = jnp.concatenate([pad_feat(t_q, Bp), pad_feat(i_q, Bp)], axis=0)

    mt = missing_types
    # memory-prompt combination: 0 -> text+image, 1/3 -> image only, else text
    sel_t = row_mask(jnp.where((mt == 1) | (mt == 3), 0.0, 1.0), B_total)
    sel_i = row_mask(jnp.where((mt == 0) | (mt == 1) | (mt == 3), 1.0, 0.0),
                     B_total)

    # text/image query routing (first B_orig samples only)
    mt1 = mt[:B_orig]
    use_ot = row_mask(mt1 == 1, B_orig)
    use_oi = row_mask(mt1 == 2, B_orig)

    # Stubbed ViLT-2 / ViLT-3 base hidden states (cls / image-start rows only;
    # everything else the original forward computed from them is unused here).
    v2cls = pad_feat(vilt2_base[:B_orig, 0, :].astype(f32), Bp)
    v2img = pad_feat(vilt2_base[:B_orig, text_len + mem_len, :].astype(f32), Bp)
    v3cls = pad_feat(vilt3_base[:, 0, :].astype(f32), Bp)

    # reconstruction loss: num_aug == 0 and eval mode -> None (skipped)

    kernel = functools.partial(_rebq_kernel, float(2 * H))
    operands = (
        q_mem, params["wn_mem"], params["wd_mem"], params["pm_mem"],
        sel_t, sel_i, use_ot, use_oi, v2cls, v2img,
        params["wn_txt"], params["wd_txt"], params["pm_txt"],
        params["wn_img"], params["wd_img"], params["pm_img"],
        v3cls,
        head["pwT"], head["pb"], head["w1T"], head["b1"],
        head["gamma"], head["beta"], head["w2T"], head["b2"],
    )
    vmem = pl.BlockSpec(memory_space=pltpu.MemorySpace.VMEM)
    logits_pad = pl.pallas_call(
        kernel,
        out_shape=jax.ShapeDtypeStruct((Bp, Np), f32),
        in_specs=[vmem] * len(operands),
        out_specs=vmem,
    )(*operands)

    logits = logits_pad[:B_orig, :cfg["TOTAL_LABELS"]]
    return {"logits": logits, "labels": labels}


# ----------------------------------------------------------------------------
if __name__ == "__main__":
    cfg = dict(
        HIDDEN_SIZE=32, KEY_HIDDEN_SIZE=32, POOL_SIZE=8, NUM_TASKS=2,
        MEM_LENGTH=8, MEM_LAYERS=2, TXT_LENGTH=8, TXT_LAYERS=2,
        IMG_LENGTH=8, IMG_LAYERS=2, TOTAL_LABELS=10, TEXT_LEN=8, SEQ=24,
    )
    assert cfg["HIDDEN_SIZE"] == cfg["KEY_HIDDEN_SIZE"]

    H, seq, text_len, mem_len = (cfg["HIDDEN_SIZE"], cfg["SEQ"],
                                 cfg["TEXT_LEN"], cfg["MEM_LENGTH"])
    B_orig, num_aug = 2, 0
    B_total = B_orig + num_aug
    task_count = 0
    Dp = max(128, _round_up(H, 128))

    key = jax.random.PRNGKey(0)
    mem_params, key = init_prompt_pool(
        key, layers=cfg["MEM_LAYERS"], pool_size=cfg["POOL_SIZE"], length=mem_len,
        emb_d=H, key_d=cfg["KEY_HIDDEN_SIZE"], n_tasks=cfg["NUM_TASKS"])
    txt_params, key = init_prompt_pool(
        key, layers=cfg["TXT_LAYERS"], pool_size=cfg["POOL_SIZE"],
        length=cfg["TXT_LENGTH"], emb_d=H, key_d=cfg["KEY_HIDDEN_SIZE"],
        n_tasks=cfg["NUM_TASKS"])
    img_params, key = init_prompt_pool(
        key, layers=cfg["IMG_LAYERS"], pool_size=cfg["POOL_SIZE"],
        length=cfg["IMG_LENGTH"], emb_d=H, key_d=cfg["KEY_HIDDEN_SIZE"],
        n_tasks=cfg["NUM_TASKS"])
    head_params, key = init_head(key, H, cfg["TOTAL_LABELS"])

    # Hoist all parameter-only preprocessing (layer folding + padding) to init.
    pp = dict(task_count=task_count, pool_size=cfg["POOL_SIZE"],
              n_tasks=cfg["NUM_TASKS"], dp=Dp)
    wn_mem, wd_mem, pm_mem = precompute_pool_group(
        mem_params, length=mem_len, half_split=False, **pp)
    wn_txt, wd_txt, pm_txt = precompute_pool_group(
        txt_params, length=cfg["TXT_LENGTH"], half_split=True, **pp)
    wn_img, wd_img, pm_img = precompute_pool_group(
        img_params, length=cfg["IMG_LENGTH"], half_split=True, **pp)
    head_prep = precompute_head(head_params, dp=Dp)
    assert cfg["TOTAL_LABELS"] <= head_prep["w2T"].shape[1]

    params = {
        "wn_mem": wn_mem, "wd_mem": wd_mem, "pm_mem": pm_mem,
        "wn_txt": wn_txt, "wd_txt": wd_txt, "pm_txt": pm_txt,
        "wn_img": wn_img, "wd_img": wd_img, "pm_img": pm_img,
        "head": head_prep,
    }

    key, kq, k2, k3 = jax.random.split(key, 4)
    queries = jax.random.normal(kq, (B_total, seq, H), jnp.float32)
    vilt2_base = jax.random.normal(k2, (B_total, seq + mem_len, H), jnp.float32)
    vilt3_base = jax.random.normal(k3, (B_orig, seq, H), jnp.float32)
    missing_types = jnp.asarray([0, 1], jnp.int32)   # 0=complete, 1=missing text
    labels = jnp.arange(B_orig, dtype=jnp.int32)

    fwd = jax.jit(functools.partial(rebq_forward, cfg=cfg, num_aug=num_aug))
    out = fwd(params, queries, vilt2_base, vilt3_base, missing_types, labels)
    logits = jax.block_until_ready(out["logits"])
    assert logits.shape == (B_orig, cfg["TOTAL_LABELS"])
    assert bool(jnp.all(jnp.isfinite(logits)))
    print("KERNEL_OK")
</pallas_src>

<mosaic_0001>
module attributes {stable_mosaic.version = 11 : i64} {
  func.func @_rebq_kernel(%arg0: memref<16x128xf32, #tpu.memory_space<vmem>>, %arg1: memref<128x128xf32, #tpu.memory_space<vmem>>, %arg2: memref<128x128xf32, #tpu.memory_space<vmem>>, %arg3: memref<128x128xf32, #tpu.memory_space<vmem>>, %arg4: memref<8x128xf32, #tpu.memory_space<vmem>>, %arg5: memref<8x128xf32, #tpu.memory_space<vmem>>, %arg6: memref<8x128xf32, #tpu.memory_space<vmem>>, %arg7: memref<8x128xf32, #tpu.memory_space<vmem>>, %arg8: memref<8x128xf32, #tpu.memory_space<vmem>>, %arg9: memref<8x128xf32, #tpu.memory_space<vmem>>, %arg10: memref<128x128xf32, #tpu.memory_space<vmem>>, %arg11: memref<128x128xf32, #tpu.memory_space<vmem>>, %arg12: memref<128x128xf32, #tpu.memory_space<vmem>>, %arg13: memref<128x128xf32, #tpu.memory_space<vmem>>, %arg14: memref<128x128xf32, #tpu.memory_space<vmem>>, %arg15: memref<128x128xf32, #tpu.memory_space<vmem>>, %arg16: memref<8x128xf32, #tpu.memory_space<vmem>>, %arg17: memref<128x128xf32, #tpu.memory_space<vmem>>, %arg18: memref<1x128xf32, #tpu.memory_space<vmem>>, %arg19: memref<128x128xf32, #tpu.memory_space<vmem>>, %arg20: memref<1x128xf32, #tpu.memory_space<vmem>>, %arg21: memref<1x128xf32, #tpu.memory_space<vmem>>, %arg22: memref<1x128xf32, #tpu.memory_space<vmem>>, %arg23: memref<128x128xf32, #tpu.memory_space<vmem>>, %arg24: memref<1x128xf32, #tpu.memory_space<vmem>>, %arg25: memref<8x128xf32, #tpu.memory_space<vmem>>) attributes {dimension_semantics = [], scalar_prefetch = 0 : i64, scratch_operands = 0 : i64, tpu.core_type = #tpu.core_type<tc>} {
    %c0 = arith.constant 0 : index
    %c0_0 = arith.constant 0 : index
    %0 = vector.load %arg0[%c0, %c0_0] : memref<16x128xf32, #tpu.memory_space<vmem>>, vector<16x128xf32>
    %c0_1 = arith.constant 0 : index
    %c0_2 = arith.constant 0 : index
    %1 = vector.load %arg1[%c0_1, %c0_2] : memref<128x128xf32, #tpu.memory_space<vmem>>, vector<128x128xf32>
    %c0_3 = arith.constant 0 : index
    %c0_4 = arith.constant 0 : index
    %2 = vector.load %arg2[%c0_3, %c0_4] : memref<128x128xf32, #tpu.memory_space<vmem>>, vector<128x128xf32>
    %c0_5 = arith.constant 0 : index
    %c0_6 = arith.constant 0 : index
    %3 = vector.load %arg3[%c0_5, %c0_6] : memref<128x128xf32, #tpu.memory_space<vmem>>, vector<128x128xf32>
    %cst = arith.constant dense<0.000000e+00> : vector<16x128xf32>
    %4 = tpu.matmul %0, %1, %cst {dimension_numbers = #tpu.dot_dimension_numbers<[1], [0], [0], [1], [0, 0, 1, 1], [], []>} : vector<16x128xf32>, vector<128x128xf32>, vector<16x128xf32> -> vector<16x128xf32>
    %5 = arith.mulf %0, %0 : vector<16x128xf32>
    %cst_7 = arith.constant dense<0.000000e+00> : vector<16x128xf32>
    %6 = tpu.matmul %5, %2, %cst_7 {dimension_numbers = #tpu.dot_dimension_numbers<[1], [0], [0], [1], [0, 0, 1, 1], [], []>} : vector<16x128xf32>, vector<128x128xf32>, vector<16x128xf32> -> vector<16x128xf32>
    %cst_8 = arith.constant 1.000000e-24 : f32
    %7 = vector.broadcast %cst_8 : f32 to vector<16x128xf32>
    %8 = arith.maximumf %6, %7 : vector<16x128xf32>
    %9 = math.rsqrt %8 : vector<16x128xf32>
    %10 = arith.mulf %4, %9 : vector<16x128xf32>
    %cst_9 = arith.constant dense<0.000000e+00> : vector<16x128xf32>
    %11 = tpu.matmul %10, %3, %cst_9 {dimension_numbers = #tpu.dot_dimension_numbers<[1], [0], [0], [1], [0, 0, 1, 1], [], []>} : vector<16x128xf32>, vector<128x128xf32>, vector<16x128xf32> -> vector<16x128xf32>
    %c0_10 = arith.constant 0 : index
    %c0_11 = arith.constant 0 : index
    %12 = vector.load %arg4[%c0_10, %c0_11] : memref<8x128xf32, #tpu.memory_space<vmem>>, vector<8x128xf32>
    %13 = vector.extract_strided_slice %11 {offsets = [0, 0], sizes = [8, 128], strides = [1, 1]} : vector<16x128xf32> to vector<8x128xf32>
    %14 = arith.mulf %12, %13 : vector<8x128xf32>
    %c0_12 = arith.constant 0 : index
    %c0_13 = arith.constant 0 : index
    %15 = vector.load %arg5[%c0_12, %c0_13] : memref<8x128xf32, #tpu.memory_space<vmem>>, vector<8x128xf32>
    %16 = vector.extract_strided_slice %11 {offsets = [8, 0], sizes = [8, 128], strides = [1, 1]} : vector<16x128xf32> to vector<8x128xf32>
    %17 = arith.mulf %15, %16 : vector<8x128xf32>
    %18 = arith.addf %14, %17 : vector<8x128xf32>
    %c0_14 = arith.constant 0 : index
    %c0_15 = arith.constant 0 : index
    %19 = vector.load %arg8[%c0_14, %c0_15] : memref<8x128xf32, #tpu.memory_space<vmem>>, vector<8x128xf32>
    %cst_16 = arith.constant 0.00999999977 : f32
    %20 = vector.broadcast %cst_16 : f32 to vector<8x128xf32>
    %21 = arith.mulf %20, %18 : vector<8x128xf32>
    %22 = arith.addf %19, %21 : vector<8x128xf32>
    %c0_17 = arith.constant 0 : index
    %c0_18 = arith.constant 0 : index
    %23 = vector.load %arg9[%c0_17, %c0_18] : memref<8x128xf32, #tpu.memory_space<vmem>>, vector<8x128xf32>
    %cst_19 = arith.constant 0.00999999977 : f32
    %24 = vector.broadcast %cst_19 : f32 to vector<8x128xf32>
    %25 = arith.mulf %24, %18 : vector<8x128xf32>
    %26 = arith.addf %23, %25 : vector<8x128xf32>
    %c0_20 = arith.constant 0 : index
    %c0_21 = arith.constant 0 : index
    %27 = vector.load %arg6[%c0_20, %c0_21] : memref<8x128xf32, #tpu.memory_space<vmem>>, vector<8x128xf32>
    %c0_22 = arith.constant 0 : index
    %c0_23 = arith.constant 0 : index
    %28 = vector.load %arg7[%c0_22, %c0_23] : memref<8x128xf32, #tpu.memory_space<vmem>>, vector<8x128xf32>
    %29 = arith.mulf %27, %22 : vector<8x128xf32>
    %cst_24 = arith.constant 1.000000e+00 : f32
    %30 = vector.broadcast %cst_24 : f32 to vector<8x128xf32>
    %31 = arith.subf %30, %27 : vector<8x128xf32>
    %32 = vector.extract_strided_slice %0 {offsets = [0, 0], sizes = [8, 128], strides = [1, 1]} : vector<16x128xf32> to vector<8x128xf32>
    %33 = arith.mulf %31, %32 : vector<8x128xf32>
    %34 = arith.addf %29, %33 : vector<8x128xf32>
    %35 = arith.mulf %28, %26 : vector<8x128xf32>
    %cst_25 = arith.constant 1.000000e+00 : f32
    %36 = vector.broadcast %cst_25 : f32 to vector<8x128xf32>
    %37 = arith.subf %36, %28 : vector<8x128xf32>
    %38 = vector.extract_strided_slice %0 {offsets = [8, 0], sizes = [8, 128], strides = [1, 1]} : vector<16x128xf32> to vector<8x128xf32>
    %39 = arith.mulf %37, %38 : vector<8x128xf32>
    %40 = arith.addf %35, %39 : vector<8x128xf32>
    %c0_26 = arith.constant 0 : index
    %c0_27 = arith.constant 0 : index
    %41 = vector.load %arg10[%c0_26, %c0_27] : memref<128x128xf32, #tpu.memory_space<vmem>>, vector<128x128xf32>
    %c0_28 = arith.constant 0 : index
    %c0_29 = arith.constant 0 : index
    %42 = vector.load %arg11[%c0_28, %c0_29] : memref<128x128xf32, #tpu.memory_space<vmem>>, vector<128x128xf32>
    %c0_30 = arith.constant 0 : index
    %c0_31 = arith.constant 0 : index
    %43 = vector.load %arg12[%c0_30, %c0_31] : memref<128x128xf32, #tpu.memory_space<vmem>>, vector<128x128xf32>
    %cst_32 = arith.constant dense<0.000000e+00> : vector<8x128xf32>
    %44 = tpu.matmul %34, %41, %cst_32 {dimension_numbers = #tpu.dot_dimension_numbers<[1], [0], [0], [1], [0, 0, 1, 1], [], []>} : vector<8x128xf32>, vector<128x128xf32>, vector<8x128xf32> -> vector<8x128xf32>
    %45 = arith.mulf %34, %34 : vector<8x128xf32>
    %cst_33 = arith.constant dense<0.000000e+00> : vector<8x128xf32>
    %46 = tpu.matmul %45, %42, %cst_33 {dimension_numbers = #tpu.dot_dimension_numbers<[1], [0], [0], [1], [0, 0, 1, 1], [], []>} : vector<8x128xf32>, vector<128x128xf32>, vector<8x128xf32> -> vector<8x128xf32>
    %cst_34 = arith.constant 1.000000e-24 : f32
    %47 = vector.broadcast %cst_34 : f32 to vector<8x128xf32>
    %48 = arith.maximumf %46, %47 : vector<8x128xf32>
    %49 = math.rsqrt %48 : vector<8x128xf32>
    %50 = arith.mulf %44, %49 : vector<8x128xf32>
    %cst_35 = arith.constant dense<0.000000e+00> : vector<8x128xf32>
    %51 = tpu.matmul %50, %43, %cst_35 {dimension_numbers = #tpu.dot_dimension_numbers<[1], [0], [0], [1], [0, 0, 1, 1], [], []>} : vector<8x128xf32>, vector<128x128xf32>, vector<8x128xf32> -> vector<8x128xf32>
    %c0_36 = arith.constant 0 : index
    %c0_37 = arith.constant 0 : index
    %52 = vector.load %arg13[%c0_36, %c0_37] : memref<128x128xf32, #tpu.memory_space<vmem>>, vector<128x128xf32>
    %c0_38 = arith.constant 0 : index
    %c0_39 = arith.constant 0 : index
    %53 = vector.load %arg14[%c0_38, %c0_39] : memref<128x128xf32, #tpu.memory_space<vmem>>, vector<128x128xf32>
    %c0_40 = arith.constant 0 : index
    %c0_41 = arith.constant 0 : index
    %54 = vector.load %arg15[%c0_40, %c0_41] : memref<128x128xf32, #tpu.memory_space<vmem>>, vector<128x128xf32>
    %cst_42 = arith.constant dense<0.000000e+00> : vector<8x128xf32>
    %55 = tpu.matmul %40, %52, %cst_42 {dimension_numbers = #tpu.dot_dimension_numbers<[1], [0], [0], [1], [0, 0, 1, 1], [], []>} : vector<8x128xf32>, vector<128x128xf32>, vector<8x128xf32> -> vector<8x128xf32>
    %56 = arith.mulf %40, %40 : vector<8x128xf32>
    %cst_43 = arith.constant dense<0.000000e+00> : vector<8x128xf32>
    %57 = tpu.matmul %56, %53, %cst_43 {dimension_numbers = #tpu.dot_dimension_numbers<[1], [0], [0], [1], [0, 0, 1, 1], [], []>} : vector<8x128xf32>, vector<128x128xf32>, vector<8x128xf32> -> vector<8x128xf32>
    %cst_44 = arith.constant 1.000000e-24 : f32
    %58 = vector.broadcast %cst_44 : f32 to vector<8x128xf32>
    %59 = arith.maximumf %57, %58 : vector<8x128xf32>
    %60 = math.rsqrt %59 : vector<8x128xf32>
    %61 = arith.mulf %55, %60 : vector<8x128xf32>
    %cst_45 = arith.constant dense<0.000000e+00> : vector<8x128xf32>
    %62 = tpu.matmul %61, %54, %cst_45 {dimension_numbers = #tpu.dot_dimension_numbers<[1], [0], [0], [1], [0, 0, 1, 1], [], []>} : vector<8x128xf32>, vector<128x128xf32>, vector<8x128xf32> -> vector<8x128xf32>
    %63 = arith.addf %51, %62 : vector<8x128xf32>
    %c0_46 = arith.constant 0 : index
    %c0_47 = arith.constant 0 : index
    %64 = vector.load %arg16[%c0_46, %c0_47] : memref<8x128xf32, #tpu.memory_space<vmem>>, vector<8x128xf32>
    %cst_48 = arith.constant 0.00999999977 : f32
    %65 = vector.broadcast %cst_48 : f32 to vector<8x128xf32>
    %66 = arith.mulf %65, %63 : vector<8x128xf32>
    %67 = arith.addf %64, %66 : vector<8x128xf32>
    %c0_49 = arith.constant 0 : index
    %c0_50 = arith.constant 0 : index
    %68 = vector.load %arg17[%c0_49, %c0_50] : memref<128x128xf32, #tpu.memory_space<vmem>>, vector<128x128xf32>
    %cst_51 = arith.constant dense<0.000000e+00> : vector<8x128xf32>
    %69 = tpu.matmul %67, %68, %cst_51 {dimension_numbers = #tpu.dot_dimension_numbers<[1], [0], [0], [1], [0, 0, 1, 1], [], []>} : vector<8x128xf32>, vector<128x128xf32>, vector<8x128xf32> -> vector<8x128xf32>
    %c0_52 = arith.constant 0 : index
    %c0_53 = arith.constant 0 : index
    %70 = vector.load %arg18[%c0_52, %c0_53] : memref<1x128xf32, #tpu.memory_space<vmem>>, vector<1x128xf32>
    %71 = vector.broadcast %70 : vector<1x128xf32> to vector<8x128xf32>
    %72 = arith.addf %69, %71 : vector<8x128xf32>
    %73 = math.tanh %72 : vector<8x128xf32>
    %c0_54 = arith.constant 0 : index
    %c0_55 = arith.constant 0 : index
    %74 = vector.load %arg19[%c0_54, %c0_55] : memref<128x128xf32, #tpu.memory_space<vmem>>, vector<128x128xf32>
    %cst_56 = arith.constant dense<0.000000e+00> : vector<8x128xf32>
    %75 = tpu.matmul %73, %74, %cst_56 {dimension_numbers = #tpu.dot_dimension_numbers<[1], [0], [0], [1], [0, 0, 1, 1], [], []>} : vector<8x128xf32>, vector<128x128xf32>, vector<8x128xf32> -> vector<8x128xf32>
    %c0_57 = arith.constant 0 : index
    %c0_58 = arith.constant 0 : index
    %76 = vector.load %arg20[%c0_57, %c0_58] : memref<1x128xf32, #tpu.memory_space<vmem>>, vector<1x128xf32>
    %77 = vector.broadcast %76 : vector<1x128xf32> to vector<8x128xf32>
    %78 = arith.addf %75, %77 : vector<8x128xf32>
    %cst_59 = arith.constant dense<0.000000e+00> : vector<8xf32>
    %79 = vector.multi_reduction <add>, %78, %cst_59 [1] : vector<8x128xf32> to vector<8xf32>
    %80 = vector.shape_cast %79 : vector<8xf32> to vector<8x1xf32>
    %cst_60 = arith.constant 1.562500e-02 : f32
    %81 = vector.broadcast %cst_60 : f32 to vector<8x1xf32>
    %82 = arith.mulf %80, %81 : vector<8x1xf32>
    %83 = arith.mulf %78, %78 : vector<8x128xf32>
    %cst_61 = arith.constant dense<0.000000e+00> : vector<8xf32>
    %84 = vector.multi_reduction <add>, %83, %cst_61 [1] : vector<8x128xf32> to vector<8xf32>
    %85 = vector.shape_cast %84 : vector<8xf32> to vector<8x1xf32>
    %cst_62 = arith.constant 1.562500e-02 : f32
    %86 = vector.broadcast %cst_62 : f32 to vector<8x1xf32>
    %87 = arith.mulf %85, %86 : vector<8x1xf32>
    %88 = arith.mulf %82, %82 : vector<8x1xf32>
    %89 = arith.subf %87, %88 : vector<8x1xf32>
    %cst_63 = arith.constant 0.000000e+00 : f32
    %90 = vector.broadcast %cst_63 : f32 to vector<8x1xf32>
    %91 = arith.maximumf %89, %90 : vector<8x1xf32>
    %92 = vector.broadcast %82 : vector<8x1xf32> to vector<8x128xf32>
    %93 = arith.subf %78, %92 : vector<8x128xf32>
    %cst_64 = arith.constant 9.99999974E-6 : f32
    %94 = vector.broadcast %cst_64 : f32 to vector<8x1xf32>
    %95 = arith.addf %91, %94 : vector<8x1xf32>
    %96 = math.rsqrt %95 : vector<8x1xf32>
    %97 = vector.broadcast %96 : vector<8x1xf32> to vector<8x128xf32>
    %98 = arith.mulf %93, %97 : vector<8x128xf32>
    %c0_65 = arith.constant 0 : index
    %c0_66 = arith.constant 0 : index
    %99 = vector.load %arg21[%c0_65, %c0_66] : memref<1x128xf32, #tpu.memory_space<vmem>>, vector<1x128xf32>
    %100 = vector.broadcast %99 : vector<1x128xf32> to vector<8x128xf32>
    %101 = arith.mulf %98, %100 : vector<8x128xf32>
    %c0_67 = arith.constant 0 : index
    %c0_68 = arith.constant 0 : index
    %102 = vector.load %arg22[%c0_67, %c0_68] : memref<1x128xf32, #tpu.memory_space<vmem>>, vector<1x128xf32>
    %103 = vector.broadcast %102 : vector<1x128xf32> to vector<8x128xf32>
    %104 = arith.addf %101, %103 : vector<8x128xf32>
    %cst_69 = arith.constant 5.000000e-01 : f32
    %105 = vector.broadcast %cst_69 : f32 to vector<8x128xf32>
    %106 = arith.mulf %105, %104 : vector<8x128xf32>
    %cst_70 = arith.constant 0.707106769 : f32
    %107 = vector.broadcast %cst_70 : f32 to vector<8x128xf32>
    %108 = arith.mulf %104, %107 : vector<8x128xf32>
    %109 = math.erf %108 : vector<8x128xf32>
    %cst_71 = arith.constant 1.000000e+00 : f32
    %110 = vector.broadcast %cst_71 : f32 to vector<8x128xf32>
    %111 = arith.addf %110, %109 : vector<8x128xf32>
    %112 = arith.mulf %106, %111 : vector<8x128xf32>
    %c0_72 = arith.constant 0 : index
    %c0_73 = arith.constant 0 : index
    %113 = vector.load %arg23[%c0_72, %c0_73] : memref<128x128xf32, #tpu.memory_space<vmem>>, vector<128x128xf32>
    %cst_74 = arith.constant dense<0.000000e+00> : vector<8x128xf32>
    %114 = tpu.matmul %112, %113, %cst_74 {dimension_numbers = #tpu.dot_dimension_numbers<[1], [0], [0], [1], [0, 0, 1, 1], [], []>} : vector<8x128xf32>, vector<128x128xf32>, vector<8x128xf32> -> vector<8x128xf32>
    %c0_75 = arith.constant 0 : index
    %c0_76 = arith.constant 0 : index
    %115 = vector.load %arg24[%c0_75, %c0_76] : memref<1x128xf32, #tpu.memory_space<vmem>>, vector<1x128xf32>
    %116 = vector.broadcast %115 : vector<1x128xf32> to vector<8x128xf32>
    %117 = arith.addf %114, %116 : vector<8x128xf32>
    %c0_77 = arith.constant 0 : index
    %c0_78 = arith.constant 0 : index
    %118 = vector.load %arg25[%c0_77, %c0_78] : memref<8x128xf32, #tpu.memory_space<vmem>>, vector<8x128xf32>
    tpu.vector_store %arg25[%c0_77, %c0_78], %117 {strides = array<i32>} : memref<8x128xf32, #tpu.memory_space<vmem>>, vector<8x128xf32>,
    return
  }
}

</mosaic_0001>

<bundles_post_ra>
// kernel: rebq_forward.1
= control target key start
LH: loop header
LB: loop body
LE: loop exit
PB: predicated region body
PF: predicated region fallthrough
CT: control target
= control target key end

     0   :  { %s3160_s0 = inlined_call_operand.vmem [shape: f32[16,128], index: 0, kind: input, shape index: {}]   ;;  %s3161_s1 = inlined_call_operand.vmem [shape: f32[128,128], index: 1, kind: input, shape index: {}]   ;;  %s3162_s2 = inlined_call_operand.hbm [shape: f32[128,128], index: 2, kind: input, shape index: {}]   ;;  %s3163_s3 = inlined_call_operand.hbm [shape: f32[128,128], index: 3, kind: input, shape index: {}]   ;;  %s3164_s4 = inlined_call_operand.vmem [shape: f32[8,128], index: 4, kind: input, shape index: {}]   ;;  %s3165_s5 = inlined_call_operand.vmem [shape: f32[8,128], index: 5, kind: input, shape index: {}]   ;;  %s3166_s6 = inlined_call_operand.vmem [shape: f32[8,128], index: 6, kind: input, shape index: {}]   ;;  %s3167_s7 = inlined_call_operand.vmem [shape: f32[8,128], index: 7, kind: input, shape index: {}]   ;;  %s3168_s8 = inlined_call_operand.vmem [shape: f32[8,128], index: 8, kind: input, shape index: {}]   ;;  %s3169_s9 = inlined_call_operand.vmem [shape: f32[8,128], index: 9, kind: input, shape index: {}]   ;;  %s3170_s10 = inlined_call_operand.hbm [shape: f32[128,128], index: 10, kind: input, shape index: {}]   ;;  %s3171_s11 = inlined_call_operand.hbm [shape: f32[128,128], index: 11, kind: input, shape index: {}]   ;;  %s3172_s12 = inlined_call_operand.hbm [shape: f32[128,128], index: 12, kind: input, shape index: {}]   ;;  %s3173_s13 = inlined_call_operand.hbm [shape: f32[128,128], index: 13, kind: input, shape index: {}]   ;;  %s3174_s14 = inlined_call_operand.hbm [shape: f32[128,128], index: 14, kind: input, shape index: {}]   ;;  %s3175_s15 = inlined_call_operand.hbm [shape: f32[128,128], index: 15, kind: input, shape index: {}]   ;;  %s3176_s16 = inlined_call_operand.vmem [shape: f32[8,128], index: 16, kind: input, shape index: {}]   ;;  %s3177_s17 = inlined_call_operand.hbm [shape: f32[128,128], index: 17, kind: input, shape index: {}]   ;;  %s3178_s18 = inlined_call_operand.vmem [shape: f32[1,128], index: 18, kind: input, shape index: {}]   ;;  %s3179_s19 = inlined_call_operand.hbm [shape: f32[128,128], index: 19, kind: input, shape index: {}]   ;;  %s3180_s20 = inlined_call_operand.vmem [shape: f32[1,128], index: 20, kind: input, shape index: {}]   ;;  %s3181_s21 = inlined_call_operand.vmem [shape: f32[1,128], index: 21, kind: input, shape index: {}]   ;;  %s3182_s22 = inlined_call_operand.vmem [shape: f32[1,128], index: 22, kind: input, shape index: {}]   ;;  %s3183_s23 = inlined_call_operand.hbm [shape: f32[128,128], index: 23, kind: input, shape index: {}]   ;;  %s3184_s24 = inlined_call_operand.vmem [shape: f32[1,128], index: 24, kind: input, shape index: {}]   ;;  %s3185_s25 = inlined_call_operand.vmem [shape: f32[8,128], index: 25, kind: output, shape index: {}]  }
   0x1   :  { %3190 = sst [smem:[#allocation25_spill]] %s3160_s0 }
   0x2   :  { %3191 = sst [smem:[#allocation26_spill]] %s3161_s1 }
   0x3   :  { %3192 = sst [smem:[#allocation27_spill]] %s3162_s2 }
   0x4   :  { %3193 = sst [smem:[#allocation28_spill]] %s3163_s3 }
   0x5   :  { %3194 = sst [smem:[#allocation29_spill]] %s3164_s4 }
   0x6   :  { %3195 = sst [smem:[#allocation30_spill]] %s3165_s5 }
   0x7   :  { %3196 = sst [smem:[#allocation31_spill]] %s3166_s6 }
   0x8   :  { %3197 = sst [smem:[#allocation32_spill]] %s3167_s7 }
   0x9   :  { %3198 = sst [smem:[#allocation33_spill]] %s3168_s8 }
   0xa   :  { %3199 = sst [smem:[#allocation34_spill]] %s3169_s9 }
   0xb   :  { %3200 = sst [smem:[#allocation35_spill]] %s3185_s25 }
   0xc   :  { %30 = vsyncpa [#allocation3], 0 }
   0xd   :  { %31 = vsyncpa [#allocation5], 0 }
   0xe   :  { %32 = vsyncpa [#allocation8], 0 }
   0xf   :  { %33 = vsyncpa [#allocation11], 0 }
  0x10   :  { %34 = vsyncpa [#allocation14], 0 }
  0x11   :  { %35 = vsyncpa [#allocation17], 0  ;;  %s2615_s29 = smov [#allocation4]   ;;  %s2616_s6 = smov [#allocation7]  }
  0x12   :  { %s57_s2 = sshll.u32 %s2615_s29, 4  ;;  %s93_s30 = sshll.u32 %s2616_s6, 4  ;;  %s58_s2 = int_to_ptr.vmem [resolvable:$true] %s57_s2  ;;  %s2761_s30 = int_to_ptr.vmem [resolvable:$true] %s93_s30 }
  0x13   :  { %s3201_s26 = sld [smem:[#allocation28_spill]] }
  0x19   :  { %s2361_s1 = scalar_lea.hbm %s3201_s26, 2048 }
  0x1a   :  { %p2362_p0 = scmp.ne.s32.totalorder %s3201_s26, %s2361_s1  ;;  %p2365_p1 = scmp.lt.u32.totalorder %s2361_s1, %s3201_s26 }
  0x1c   :  { %p2367_p2 = pnand %p2365_p1, %p2362_p0 }
  0x1e   :  { %2370 = shalt.err (!%p2367_p2)
}
  0x1f   :  { %s2371_s9 = scalar_lea.vmem %s58_s2, 2048  ;;  %p2376_p4 = scmp.lt.s32.totalorder %s58_s2, %s58_s2 }
  0x20   :  { %p2372_p3 = scmp.ne.s32.totalorder %s58_s2, %s2371_s9  ;;  %p2377_p5 = scmp.lt.s32.totalorder %s2371_s9, %s2371_s9 }
  0x22   :  { %p2378_p6 = por %p2377_p5, %p2376_p4 }
  0x24   :  { %p2379_p7 = pnand %p2378_p6, %p2372_p3 }
  0x26   :  { %2382 = shalt.err (!%p2379_p7)
}
  0x27   :  { %s2617_s5 = smov 128   ;;  %s2618_s0 = smov 8  }
  0x28   :  { %63 = dma.hbm_to_vmem [thread:$0]  %s3201_s26, 2048, %s58_s2, [#allocation5], %s2617_s5, %s2617_s5, %s2618_s0  }
  0x29   :  { %s2383_s1 = scalar_lea.hbm %s3171_s11, 2048 }
  0x2a   :  { %p2384_p8 = scmp.ne.s32.totalorder %s3171_s11, %s2383_s1  ;;  %p2387_p9 = scmp.lt.u32.totalorder %s2383_s1, %s3171_s11 }
  0x2c   :  { %p2389_p10 = pnand %p2387_p9, %p2384_p8 }
  0x2e   :  { %2392 = shalt.err (!%p2389_p10)
}
  0x2f   :  { %s2393_s9 = scalar_lea.vmem %s2761_s30, 2048  ;;  %p2398_p12 = scmp.lt.s32.totalorder %s2761_s30, %s2761_s30 }
  0x30   :  { %p2394_p11 = scmp.ne.s32.totalorder %s2761_s30, %s2393_s9  ;;  %p2399_p13 = scmp.lt.s32.totalorder %s2393_s9, %s2393_s9 }
  0x32   :  { %p2400_p0 = por %p2399_p13, %p2398_p12 }
  0x34   :  { %p2401_p1 = pnand %p2400_p0, %p2394_p11 }
  0x36   :  { %2404 = shalt.err (!%p2401_p1)
}
  0x37   :  { %99 = dma.hbm_to_vmem [thread:$0]  %s3171_s11, 2048, %s2761_s30, [#allocation8], %s2617_s5, %s2617_s5, %s2618_s0  }
  0x38   :  { %s2619_s29 = smov [#allocation10]   ;;  %s2620_s7 = smov [#allocation13]  }
  0x39   :  { %s117_s6 = sshll.u32 %s2619_s29, 4  ;;  %s141_s3 = sshll.u32 %s2620_s7, 4  ;;  %s118_s6 = int_to_ptr.vmem [resolvable:$true] %s117_s6  ;;  %s2798_s3 = int_to_ptr.vmem [resolvable:$true] %s141_s3 }
  0x3a   :  { %s2405_s27 = scalar_lea.hbm %s3173_s13, 2048 }
  0x3b   :  { %p2406_p2 = scmp.ne.s32.totalorder %s3173_s13, %s2405_s27  ;;  %p2409_p3 = scmp.lt.u32.totalorder %s2405_s27, %s3173_s13 }
  0x3d   :  { %p2411_p4 = pnand %p2409_p3, %p2406_p2 }
  0x3f   :  { %2414 = shalt.err (!%p2411_p4)
}
  0x40   :  { %s2415_s11 = scalar_lea.vmem %s118_s6, 2048  ;;  %p2420_p6 = scmp.lt.s32.totalorder %s118_s6, %s118_s6 }
  0x41   :  { %p2416_p5 = scmp.ne.s32.totalorder %s118_s6, %s2415_s11  ;;  %p2421_p7 = scmp.lt.s32.totalorder %s2415_s11, %s2415_s11 }
  0x43   :  { %p2422_p8 = por %p2421_p7, %p2420_p6 }
  0x45   :  { %p2423_p9 = pnand %p2422_p8, %p2416_p5 }
  0x47   :  { %2426 = shalt.err (!%p2423_p9)
}
  0x48   :  { %123 = dma.hbm_to_vmem [thread:$0]  %s3173_s13, 2048, %s118_s6, [#allocation11], %s2617_s5, %s2617_s5, %s2618_s0  }
  0x49   :  { %s2427_s25 = scalar_lea.hbm %s3175_s15, 2048 }
  0x4a   :  { %p2428_p10 = scmp.ne.s32.totalorder %s3175_s15, %s2427_s25  ;;  %p2431_p11 = scmp.lt.u32.totalorder %s2427_s25, %s3175_s15 }
  0x4c   :  { %p2433_p12 = pnand %p2431_p11, %p2428_p10 }
  0x4e   :  { %2436 = shalt.err (!%p2433_p12)
}
  0x4f   :  { %s2437_s4 = scalar_lea.vmem %s2798_s3, 2048  ;;  %p2442_p0 = scmp.lt.s32.totalorder %s2798_s3, %s2798_s3 }
  0x50   :  { %p2438_p13 = scmp.ne.s32.totalorder %s2798_s3, %s2437_s4  ;;  %p2443_p1 = scmp.lt.s32.totalorder %s2437_s4, %s2437_s4 }
  0x52   :  { %p2444_p2 = por %p2443_p1, %p2442_p0 }
  0x54   :  { %p2445_p3 = pnand %p2444_p2, %p2438_p13 }
  0x56   :  { %2448 = shalt.err (!%p2445_p3)
}
  0x57   :  { %147 = dma.hbm_to_vmem [thread:$0]  %s3175_s15, 2048, %s2798_s3, [#allocation14], %s2617_s5, %s2617_s5, %s2618_s0  }
  0x58   :  { %s2621_s28 = smov [#allocation16]   ;;  %s2622_s11 = smov [#allocation2]  }
  0x59   :  { %s169_s9 = sshll.u32 %s2621_s28, 4  ;;  %s45_s30 = sshll.u32 %s2622_s11, 4  ;;  %s170_s9 = int_to_ptr.vmem [resolvable:$true] %s169_s9  ;;  %s2835_s30 = int_to_ptr.vmem [resolvable:$true] %s45_s30 }
  0x5a   :  { %s2449_s29 = scalar_lea.hbm %s3179_s19, 2048 }
  0x5b   :  { %p2450_p4 = scmp.ne.s32.totalorder %s3179_s19, %s2449_s29  ;;  %p2453_p5 = scmp.lt.u32.totalorder %s2449_s29, %s3179_s19 }
  0x5d   :  { %p2455_p6 = pnand %p2453_p5, %p2450_p4 }
  0x5f   :  { %2458 = shalt.err (!%p2455_p6)
}
  0x60   :  { %s2459_s15 = scalar_lea.vmem %s170_s9, 2048  ;;  %p2464_p8 = scmp.lt.s32.totalorder %s170_s9, %s170_s9 }
  0x61   :  { %p2460_p7 = scmp.ne.s32.totalorder %s170_s9, %s2459_s15  ;;  %p2465_p9 = scmp.lt.s32.totalorder %s2459_s15, %s2459_s15 }
  0x63   :  { %p2466_p10 = por %p2465_p9, %p2464_p8 }
  0x65   :  { %p2467_p11 = pnand %p2466_p10, %p2460_p7 }
  0x67   :  { %2470 = shalt.err (!%p2467_p11)
}
  0x68   :  { %175 = dma.hbm_to_vmem [thread:$0]  %s3179_s19, 2048, %s170_s9, [#allocation17], %s2617_s5, %s2617_s5, %s2618_s0  }
  0x69   :  { %s3202_s6 = sld [smem:[#allocation27_spill]] }
  0x6f   :  { %s2471_s28 = scalar_lea.hbm %s3202_s6, 2048 }
  0x70   :  { %p2472_p12 = scmp.ne.s32.totalorder %s3202_s6, %s2471_s28  ;;  %p2475_p13 = scmp.lt.u32.totalorder %s2471_s28, %s3202_s6 }
  0x72   :  { %p2477_p0 = pnand %p2475_p13, %p2472_p12 }
  0x74   :  { %2480 = shalt.err (!%p2477_p0)
}
  0x75   :  { %s2481_s25 = scalar_lea.vmem %s2835_s30, 2048  ;;  %p2486_p2 = scmp.lt.s32.totalorder %s2835_s30, %s2835_s30 }
  0x76   :  { %p2482_p1 = scmp.ne.s32.totalorder %s2835_s30, %s2481_s25  ;;  %p2487_p3 = scmp.lt.s32.totalorder %s2481_s25, %s2481_s25 }
  0x78   :  { %p2488_p4 = por %p2487_p3, %p2486_p2 }
  0x7a   :  { %p2489_p5 = pnand %p2488_p4, %p2482_p1 }
  0x7c   :  { %2492 = shalt.err (!%p2489_p5)
}
  0x7d   :  { %51 = dma.hbm_to_vmem [thread:$0]  %s3202_s6, 2048, %s2835_s30, [#allocation3], %s2617_s5, %s2617_s5, %s2618_s0  }
  0x7e   :  { %s2623_s7 = smov [#allocation6]   ;;  %s2624_s8 = smov [#allocation9]  }
  0x7f   :  { %s81_s1 = sshll.u32 %s2623_s7, 4  ;;  %s105_s15 = sshll.u32 %s2624_s8, 4  ;;  %s82_s1 = int_to_ptr.vmem [resolvable:$true] %s81_s1  ;;  %s2872_s15 = int_to_ptr.vmem [resolvable:$true] %s105_s15 }
  0x80   :  { %s2493_s4 = scalar_lea.hbm %s3170_s10, 2048 }
  0x81   :  { %p2494_p6 = scmp.ne.s32.totalorder %s3170_s10, %s2493_s4  ;;  %p2497_p7 = scmp.lt.u32.totalorder %s2493_s4, %s3170_s10 }
  0x83   :  { %p2499_p8 = pnand %p2497_p7, %p2494_p6 }
  0x85   :  { %2502 = shalt.err (!%p2499_p8)
}
  0x86   :  { %s2503_s30 = scalar_lea.vmem %s82_s1, 2048  ;;  %p2508_p10 = scmp.lt.s32.totalorder %s82_s1, %s82_s1 }
  0x87   :  { %p2504_p9 = scmp.ne.s32.totalorder %s82_s1, %s2503_s30  ;;  %p2509_p11 = scmp.lt.s32.totalorder %s2503_s30, %s2503_s30 }
  0x89   :  { %p2510_p12 = por %p2509_p11, %p2508_p10 }
  0x8b   :  { %p2511_p13 = pnand %p2510_p12, %p2504_p9 }
  0x8d   :  { %2514 = shalt.err (!%p2511_p13)
}
  0x8e   :  { %87 = dma.hbm_to_vmem [thread:$0]  %s3170_s10, 2048, %s82_s1, [#allocation5], %s2617_s5, %s2617_s5, %s2618_s0  }
  0x8f   :  { %s2515_s19 = scalar_lea.hbm %s3172_s12, 2048 }
  0x90   :  { %p2516_p0 = scmp.ne.s32.totalorder %s3172_s12, %s2515_s19  ;;  %p2519_p1 = scmp.lt.u32.totalorder %s2515_s19, %s3172_s12 }
  0x92   :  { %p2521_p2 = pnand %p2519_p1, %p2516_p0 }
  0x94   :  { %2524 = shalt.err (!%p2521_p2)
}
  0x95   :  { %s2525_s27 = scalar_lea.vmem %s2872_s15, 2048  ;;  %p2530_p4 = scmp.lt.s32.totalorder %s2872_s15, %s2872_s15 }
  0x96   :  { %p2526_p3 = scmp.ne.s32.totalorder %s2872_s15, %s2525_s27  ;;  %p2531_p5 = scmp.lt.s32.totalorder %s2525_s27, %s2525_s27 }
  0x98   :  { %p2532_p6 = por %p2531_p5, %p2530_p4 }
  0x9a   :  { %p2533_p7 = pnand %p2532_p6, %p2526_p3 }
  0x9c   :  { %2536 = shalt.err (!%p2533_p7)
}
  0x9d   :  { %111 = dma.hbm_to_vmem [thread:$0]  %s3172_s12, 2048, %s2872_s15, [#allocation8], %s2617_s5, %s2617_s5, %s2618_s0  }
  0x9e   :  { %s2625_s4 = smov [#allocation12]   ;;  %s2626_s28 = smov [#allocation15]  }
  0x9f   :  { %s129_s13 = sshll.u32 %s2625_s4, 4  ;;  %s155_s11 = sshll.u32 %s2626_s28, 4  ;;  %s130_s13 = int_to_ptr.vmem [resolvable:$true] %s129_s13  ;;  %s2909_s11 = int_to_ptr.vmem [resolvable:$true] %s155_s11 }
  0xa0   :  { %s2537_s6 = scalar_lea.hbm %s3174_s14, 2048 }
  0xa1   :  { %p2538_p8 = scmp.ne.s32.totalorder %s3174_s14, %s2537_s6  ;;  %p2541_p9 = scmp.lt.u32.totalorder %s2537_s6, %s3174_s14 }
  0xa3   :  { %p2543_p10 = pnand %p2541_p9, %p2538_p8 }
  0xa5   :  { %2546 = shalt.err (!%p2543_p10)
}
  0xa6   :  { %s2547_s12 = scalar_lea.vmem %s130_s13, 2048  ;;  %p2552_p12 = scmp.lt.s32.totalorder %s130_s13, %s130_s13 }
  0xa7   :  { %p2548_p11 = scmp.ne.s32.totalorder %s130_s13, %s2547_s12  ;;  %p2553_p13 = scmp.lt.s32.totalorder %s2547_s12, %s2547_s12 }
  0xa9   :  { %p2554_p0 = por %p2553_p13, %p2552_p12 }
  0xab   :  { %p2555_p1 = pnand %p2554_p0, %p2548_p11 }
  0xad   :  { %2558 = shalt.err (!%p2555_p1)
}
  0xae   :  { %135 = dma.hbm_to_vmem [thread:$0]  %s3174_s14, 2048, %s130_s13, [#allocation11], %s2617_s5, %s2617_s5, %s2618_s0  }
  0xaf   :  { %s2559_s3 = scalar_lea.hbm %s3177_s17, 2048 }
  0xb0   :  { %p2560_p2 = scmp.ne.s32.totalorder %s3177_s17, %s2559_s3  ;;  %p2563_p3 = scmp.lt.u32.totalorder %s2559_s3, %s3177_s17 }
  0xb2   :  { %p2565_p4 = pnand %p2563_p3, %p2560_p2 }
  0xb4   :  { %2568 = shalt.err (!%p2565_p4)
}
  0xb5   :  { %s2569_s28 = scalar_lea.vmem %s2909_s11, 2048  ;;  %p2574_p6 = scmp.lt.s32.totalorder %s2909_s11, %s2909_s11 }
  0xb6   :  { %p2570_p5 = scmp.ne.s32.totalorder %s2909_s11, %s2569_s28  ;;  %p2575_p7 = scmp.lt.s32.totalorder %s2569_s28, %s2569_s28 }
  0xb8   :  { %p2576_p8 = por %p2575_p7, %p2574_p6 }
  0xba   :  { %p2577_p9 = pnand %p2576_p8, %p2570_p5 }
  0xbc   :  { %2580 = shalt.err (!%p2577_p9)
}
  0xbd   :  { %161 = dma.hbm_to_vmem [thread:$0]  %s3177_s17, 2048, %s2909_s11, [#allocation14], %s2617_s5, %s2617_s5, %s2618_s0  }
  0xbe   :  { %s2627_s2 = smov [#allocation18]   ;;  %s2581_s29 = scalar_lea.hbm %s3183_s23, 2048 }
  0xbf   :  { %s187_s30 = sshll.u32 %s2627_s2, 4  ;;  %p2582_p10 = scmp.ne.s32.totalorder %s3183_s23, %s2581_s29  ;;  %s188_s30 = int_to_ptr.vmem [resolvable:$true] %s187_s30 }
  0xc0   :  { %p2585_p11 = scmp.lt.u32.totalorder %s2581_s29, %s3183_s23 }
  0xc2   :  { %p2587_p12 = pnand %p2585_p11, %p2582_p10 }
  0xc4   :  { %2590 = shalt.err (!%p2587_p12)
}
  0xc5   :  { %s2591_s9 = scalar_lea.vmem %s188_s30, 2048  ;;  %p2596_p0 = scmp.lt.s32.totalorder %s188_s30, %s188_s30 }
  0xc6   :  { %p2592_p13 = scmp.ne.s32.totalorder %s188_s30, %s2591_s9  ;;  %p2597_p1 = scmp.lt.s32.totalorder %s2591_s9, %s2591_s9 }
  0xc8   :  { %p2598_p2 = por %p2597_p1, %p2596_p0 }
  0xca   :  { %p2599_p3 = pnand %p2598_p2, %p2592_p13 }
  0xcc   :  { %2602 = shalt.err (!%p2599_p3)
}
  0xcd   :  { %193 = dma.hbm_to_vmem [thread:$0]  %s3183_s23, 2048, %s188_s30, [#allocation17], %s2617_s5, %s2617_s5, %s2618_s0  }
  0xce   :  { %2603 = dma.done.wait [#allocation3], 2048  }
  0xcf   :  { %2604 = vsyncadd [#allocation3], 4294965248 }
  0xd0   :  { %2605 = dma.done.wait [#allocation5], 4096  }
  0xd1   :  { %2606 = vsyncadd [#allocation5], 4294963200 }
  0xd2   :  { %2607 = dma.done.wait [#allocation8], 4096  }
  0xd3   :  { %2608 = vsyncadd [#allocation8], 4294963200 }
  0xd4   :  { %2609 = dma.done.wait [#allocation11], 4096  }
  0xd5   :  { %2610 = vsyncadd [#allocation11], 4294963200 }
  0xd6   :  { %2611 = dma.done.wait [#allocation14], 4096  }
  0xd7   :  { %2612 = vsyncadd [#allocation14], 4294963200 }
  0xd8   :  { %2613 = dma.done.wait [#allocation17], 4096  }
  0xd9   :  { %2614 = vsyncadd [#allocation17], 4294963200  ;;  %v247_v0 = vld [vmem:[#allocation2] sm:$0xff]  ;;  %v248_v1 = vld [vmem:[#allocation2 + $0x8] sm:$0xff]  ;;  %s3203_s0 = sld [smem:[#allocation26_spill]]  ;;  %s3204_s19 = sld [smem:[#allocation25_spill]] }
  0xda   :  { %v249_v2 = vld [vmem:[#allocation2 + $0x10] sm:$0xff]  ;;  %v2049_v3 = vpack.c.bf16 %v248_v1, %v247_v0  ;;  %v250_v4 = vld [vmem:[#allocation2 + $0x18] sm:$0xff]  ;;  %v251_v5 = vld [vmem:[#allocation2 + $0x20] sm:$0xff]  ;;  %vm2629_vm0 = vmmov 0   ;;  %s3205_s6 = sld [smem:[#allocation30_spill]]  ;;  %s3206_s25 = sld [smem:[#allocation29_spill]] }
  0xdb   :  { %v2053_v6 = vpack.c.bf16 %v250_v4, %v249_v2  ;;  %v252_v7 = vld [vmem:[#allocation2 + $0x28] sm:$0xff]  ;;  %v253_v17 = vld [vmem:[#allocation2 + $0x30] sm:$0xff]  ;;  %v254_v18 = vld [vmem:[#allocation2 + $0x38] sm:$0xff]  ;;  %s3207_s15 = sld [smem:[#allocation31_spill]]  ;;  %s3208_s11 = sld [smem:[#allocation33_spill]] }
  0xdc   :  { %2050 = vmatprep.subr.bf16.mxu1 %v2049_v3  ;;  %v2057_v15 = vpack.c.bf16 %v252_v7, %v251_v5  ;;  %v2061_v23 = vpack.c.bf16 %v254_v18, %v253_v17  ;;  %v255_v25 = vld [vmem:[#allocation2 + $0x40] sm:$0xff]  ;;  %v256_v26 = vld [vmem:[#allocation2 + $0x48] sm:$0xff]  ;;  %v257_v31 = vld [vmem:[#allocation2 + $0x50] sm:$0xff]  ;;  %s3209_s7 = sld [smem:[#allocation34_spill]]  ;;  %s3210_s27 = sld [smem:[#allocation32_spill]] }
  0xdd   :  { %2052 = vmatpush3.bf16.msra.mxu1 %v2049_v3  ;;  %v2065_v30 = vpack.c.bf16 %v256_v26, %v255_v25  ;;  %v258_v32 = vld [vmem:[#allocation2 + $0x58] sm:$0xff]  ;;  %v259_v37 = vld [vmem:[#allocation2 + $0x60] sm:$0xff]  ;;  %v260_v38 = vld [vmem:[#allocation2 + $0x68] sm:$0xff]  ;;  %s3211_s26 = sld [smem:[#allocation35_spill]] }
  0xde   :  { %2054 = vmatprep.subr.bf16.mxu1 %v2053_v6  ;;  %v2069_v36 = vpack.c.bf16 %v258_v32, %v257_v31  ;;  %v2073_v42 = vpack.c.bf16 %v260_v38, %v259_v37  ;;  %v261_v43 = vld [vmem:[#allocation2 + $0x70] sm:$0xff]  ;;  %v262_v44 = vld [vmem:[#allocation2 + $0x78] sm:$0xff]  ;;  %v263_v51 = vld [vmem:[#allocation4] sm:$0xff] }
  0xdf   :  { %v231_v8 = vld [vmem:[%s3203_s0] sm:$0xff]  ;;  %v232_v9 = vld [vmem:[%s3203_s0 + $0x8] sm:$0xff]  ;;  %v233_v11 = vld [vmem:[%s3203_s0 + $0x10] sm:$0xff]  ;;  %v2077_v48 = vpack.c.bf16 %v262_v44, %v261_v43 }
  0xe0   :  { %v2017_v10 = vpack.c.bf16 %v232_v9, %v231_v8  ;;  %v234_v12 = vld [vmem:[%s3203_s0 + $0x18] sm:$0xff]  ;;  %v235_v14 = vld [vmem:[%s3203_s0 + $0x20] sm:$0xff]  ;;  %v236_v16 = vld [vmem:[%s3203_s0 + $0x28] sm:$0xff] }
  0xe1   :  { %v2021_v13 = vpack.c.bf16 %v234_v12, %v233_v11  ;;  %v2025_v19 = vpack.c.bf16 %v236_v16, %v235_v14  ;;  %2056 = vmatpush3.bf16.msra.mxu1 %v2053_v6  ;;  %v237_v20 = vld [vmem:[%s3203_s0 + $0x30] sm:$0xff]  ;;  %v238_v21 = vld [vmem:[%s3203_s0 + $0x38] sm:$0xff]  ;;  %v2988_v22 = vld [vmem:[%s3204_s19] sm:$0xff]  ;;  %v2628_v14 = vmov 0.0|0.0  }
  0xe2   :  { %2018 = vmatprep.subr.bf16.mxu0 %v2017_v10  ;;  %2058 = vmatprep.subr.bf16.mxu1 %v2057_v15  ;;  %v354_v24 = vmul.f32 %v2988_v22, %v2988_v22  ;;  %v2029_v27 = vpack.c.bf16 %v238_v21, %v237_v20  ;;  %v239_v28 = vld [vmem:[%s3203_s0 + $0x40] sm:$0xff]  ;;  %v240_v29 = vld [vmem:[%s3203_s0 + $0x48] sm:$0xff]  ;;  %v241_v34 = vld [vmem:[%s3203_s0 + $0x50] sm:$0xff] }
  0xe3   :  { %2020 = vmatpush3.bf16.msra.mxu0 %v2017_v10  ;;  %1629 = vmatprep.mubr.f32.mxu0 %v2988_v22  ;;  %v2033_v33 = vpack.c.bf16 %v240_v29, %v239_v28  ;;  %v242_v35 = vld [vmem:[%s3203_s0 + $0x58] sm:$0xff]  ;;  %v243_v40 = vld [vmem:[%s3203_s0 + $0x60] sm:$0xff]  ;;  %v244_v41 = vld [vmem:[%s3203_s0 + $0x68] sm:$0xff] }
  0xe4   :  { %2022 = vmatprep.subr.bf16.mxu0 %v2021_v13  ;;  %1664 = vmatprep.mubr.f32.mxu1 %v354_v24  ;;  %v2037_v39 = vpack.c.bf16 %v242_v35, %v241_v34  ;;  %v2041_v45 = vpack.c.bf16 %v244_v41, %v243_v40  ;;  %v245_v46 = vld [vmem:[%s3203_s0 + $0x70] sm:$0xff]  ;;  %v246_v47 = vld [vmem:[%s3203_s0 + $0x78] sm:$0xff]  ;;  %v3020_v50 = vld [vmem:[%s3204_s19 + $0x8] sm:$0xff] }
  0xe5   :  { %2060 = vmatpush3.bf16.msra.mxu1 %v2057_v15  ;;  %v2045_v49 = vpack.c.bf16 %v246_v47, %v245_v46  ;;  %v264_v52 = vld [vmem:[#allocation4 + $0x8] sm:$0xff]  ;;  %v355_v53 = vmul.f32 %v3020_v50, %v3020_v50  ;;  %v265_v55 = vld [vmem:[#allocation4 + $0x10] sm:$0xff]  ;;  %v266_v56 = vld [vmem:[#allocation4 + $0x18] sm:$0xff] }
  0xe6   :  { %2062 = vmatprep.subr.bf16.mxu1 %v2061_v23  ;;  %v2081_v54 = vpack.c.bf16 %v264_v52, %v263_v51  ;;  %v2085_v57 = vpack.c.bf16 %v266_v56, %v265_v55  ;;  %v267_v58 = vld [vmem:[#allocation4 + $0x20] sm:$0xff]  ;;  %v268_v59 = vld [vmem:[#allocation4 + $0x28] sm:$0xff]  ;;  %v269_v61 = vld [vmem:[#allocation4 + $0x30] sm:$0xff] }
  0xe7   :  { %2024 = vmatpush3.bf16.msra.mxu0 %v2021_v13  ;;  %v2089_v60 = vpack.c.bf16 %v268_v59, %v267_v58  ;;  %v270_v62 = vld [vmem:[#allocation4 + $0x38] sm:$0xff]  ;;  %v271_v0 = vld [vmem:[#allocation4 + $0x40] sm:$0xff]  ;;  %v272_v1 = vld [vmem:[#allocation4 + $0x48] sm:$0xff] }
  0xe8   :  { %2026 = vmatprep.subr.bf16.mxu0 %v2025_v19  ;;  %v2093_v63 = vpack.c.bf16 %v270_v62, %v269_v61  ;;  %v2097_v2 = vpack.c.bf16 %v272_v1, %v271_v0  ;;  %v273_v3 = vld [vmem:[#allocation4 + $0x50] sm:$0xff]  ;;  %v274_v4 = vld [vmem:[#allocation4 + $0x58] sm:$0xff]  ;;  %v275_v6 = vld [vmem:[#allocation4 + $0x60] sm:$0xff] }
  0xe9   :  { %2064 = vmatpush3.bf16.msra.mxu1 %v2061_v23  ;;  %v2101_v5 = vpack.c.bf16 %v274_v4, %v273_v3  ;;  %v276_v7 = vld [vmem:[#allocation4 + $0x68] sm:$0xff]  ;;  %v277_v9 = vld [vmem:[#allocation4 + $0x70] sm:$0xff]  ;;  %v278_v10 = vld [vmem:[#allocation4 + $0x78] sm:$0xff] }
  0xea   :  { %2066 = vmatprep.subr.bf16.mxu1 %v2065_v30  ;;  %v2105_v8 = vpack.c.bf16 %v276_v7, %v275_v6  ;;  %v2109_v11 = vpack.c.bf16 %v278_v10, %v277_v9  ;;  %v532_v12 = vld [vmem:[#allocation6] sm:$0xff]  ;;  %v533_v13 = vld [vmem:[#allocation6 + $0x8] sm:$0xff]  ;;  %v534_v16 = vld [vmem:[#allocation6 + $0x10] sm:$0xff]  ;;  %v2630_v9 = vmov 0.0  }
  0xeb   :  { %2028 = vmatpush3.bf16.msra.mxu0 %v2025_v19  ;;  %v2114_v15 = vpack.c.bf16 %v533_v13, %v532_v12  ;;  %v535_v17 = vld [vmem:[#allocation6 + $0x18] sm:$0xff]  ;;  %v536_v19 = vld [vmem:[#allocation6 + $0x20] sm:$0xff]  ;;  %v537_v20 = vld [vmem:[#allocation6 + $0x28] sm:$0xff] }
  0xec   :  { %2030 = vmatprep.subr.bf16.mxu0 %v2029_v27  ;;  %v2117_v18 = vpack.c.bf16 %v535_v17, %v534_v16  ;;  %v2120_v21 = vpack.c.bf16 %v537_v20, %v536_v19  ;;  %v538_v23 = vld [vmem:[#allocation6 + $0x30] sm:$0xff]  ;;  %v539_v24 = vld [vmem:[#allocation6 + $0x38] sm:$0xff]  ;;  %v540_v26 = vld [vmem:[#allocation6 + $0x40] sm:$0xff] }
  0xed   :  { %2068 = vmatpush3.bf16.msra.mxu1 %v2065_v30  ;;  %v2123_v25 = vpack.c.bf16 %v539_v24, %v538_v23  ;;  %v548_v35 = vld [vmem:[#allocation7] sm:$0xff]  ;;  %v551_v43 = vld [vmem:[#allocation7 + $0x18] sm:$0xff]  ;;  %v553_v46 = vld [vmem:[#allocation7 + $0x28] sm:$0xff] }
  0xee   :  { %2070 = vmatprep.subr.bf16.mxu1 %v2069_v36  ;;  %v556_v52 = vld [vmem:[#allocation7 + $0x40] sm:$0xff]  ;;  %v542_v55 = vld [vmem:[#allocation6 + $0x50] sm:$0xff]  ;;  %v543_v56 = vld [vmem:[#allocation6 + $0x58] sm:$0xff] }
  0xef   :  { %2032 = vmatpush3.bf16.msra.mxu0 %v2029_v27  ;;  %v541_v27 = vld [vmem:[#allocation6 + $0x48] sm:$0xff]  ;;  %v558_v58 = vld [vmem:[#allocation7 + $0x50] sm:$0xff]  ;;  %v559_v59 = vld [vmem:[#allocation7 + $0x58] sm:$0xff] }
  0xf0   :  { %2034 = vmatprep.subr.bf16.mxu0 %v2033_v33  ;;  %v2126_v28 = vpack.c.bf16 %v541_v27, %v540_v26  ;;  %v544_v61 = vld [vmem:[#allocation6 + $0x60] sm:$0xff]  ;;  %v545_v62 = vld [vmem:[#allocation6 + $0x68] sm:$0xff]  ;;  %v546_v3 = vld [vmem:[#allocation6 + $0x70] sm:$0xff] }
  0xf1   :  { %2072 = vmatpush3.bf16.msra.mxu1 %v2069_v36  ;;  %v549_v36 = vld [vmem:[#allocation7 + $0x8] sm:$0xff]  ;;  %v560_v0 = vld [vmem:[#allocation7 + $0x60] sm:$0xff]  ;;  %v547_v4 = vld [vmem:[#allocation6 + $0x78] sm:$0xff] }
  0xf2   :  { %2074 = vmatprep.subr.bf16.mxu1 %v2073_v42  ;;  %v2138_v41 = vpack.c.bf16 %v549_v36, %v548_v35  ;;  %v561_v1 = vld [vmem:[#allocation7 + $0x68] sm:$0xff]  ;;  %v562_v6 = vld [vmem:[#allocation7 + $0x70] sm:$0xff]  ;;  %v563_v7 = vld [vmem:[#allocation7 + $0x78] sm:$0xff] }
  0xf3   :  { %2036 = vmatpush3.bf16.msra.mxu0 %v2033_v33  ;;  %v514_v10 = vld [vmem:[%s3205_s6] sm:$0xff]  ;;  %v725_v26 = vld [vmem:[#allocation10 + $0x8] sm:$0xff]  ;;  %v742_v36 = vld [vmem:[#allocation12 + $0x10] sm:$0xff] }
  0xf4   :  { %2038 = vmatprep.subr.bf16.mxu0 %v2037_v39  ;;  %v522_v13 = vld [vmem:[%s3207_s15] sm:$0xff] }
  0xf5   :  { %2076 = vmatpush3.bf16.msra.mxu1 %v2073_v42  ;;  %v550_v42 = vld [vmem:[#allocation7 + $0x10] sm:$0xff]  ;;  %v517_v20 = vld [vmem:[%s3208_s11] sm:$0xff] }
  0xf6   :  { %2078 = vmatprep.subr.bf16.mxu1 %v2077_v48  ;;  %v2141_v44 = vpack.c.bf16 %v551_v43, %v550_v42  ;;  %v745_v42 = vld [vmem:[#allocation12 + $0x28] sm:$0xff] }
  0xf7   :  { %2040 = vmatpush3.bf16.msra.mxu0 %v2037_v39 }
  0xf8   :  { %2042 = vmatprep.subr.bf16.mxu0 %v2041_v45 }
  0xf9   :  { %2080 = vmatpush3.bf16.msra.mxu1 %v2077_v48  ;;  %v554_v48 = vld [vmem:[#allocation7 + $0x30] sm:$0xff] }
  0xfa   :  { %2113 = vmatprep.subr.bf16.mxu1 %v2628_v14 }
  0xfb   :  { %2044 = vmatpush3.bf16.msra.mxu0 %v2041_v45  ;;  %v552_v45 = vld [vmem:[#allocation7 + $0x20] sm:$0xff] }
  0xfc   :  { %2046 = vmatprep.subr.bf16.mxu0 %v2045_v49  ;;  %1665 = vmatmul.mubr.f32.vlgmr.msra.gmra.mrb[0].mxu1 %v355_v53  ;;  %v2144_v47 = vpack.c.bf16 %v553_v46, %v552_v45  ;;  %v557_v53 = vld [vmem:[#allocation7 + $0x48] sm:$0xff]  ;;  %v731_v45 = vld [vmem:[#allocation10 + $0x38] sm:$0xff] }
  0xfd   :  { %2115 = vmatpush3.bf16.msra.mxu1 %v2114_v15  ;;  %1734 = vmatprep.mubr.msk.f32.mxu1 %vm2629_vm0, %v2630_v9 }
  0xfe   :  { %2116 = vmatprep.subr.bf16.mxu1 %v2628_v14 }
  0xff   :  { %2048 = vmatpush3.bf16.msra.mxu0 %v2045_v49  ;;  %v555_v49 = vld [vmem:[#allocation7 + $0x38] sm:$0xff] }
 0x100   :  { %2082 = vmatprep.subr.bf16.mxu0 %v2081_v54  ;;  %v2147_v51 = vpack.c.bf16 %v555_v49, %v554_v48  ;;  %v747_v48 = vld [vmem:[#allocation12 + $0x38] sm:$0xff] }
 0x101   :  { %2118 = vmatpush3.bf16.msra.mxu1 %v2117_v18  ;;  %v525_v18 = vsub.f32 1.0, %v522_v13 }
 0x102   :  { %1630 = vmatmul.mubr.f32.vlgmr.msra.gmra.mrb[0].mxu0 %v3020_v50  ;;  %2119 = vmatprep.subr.bf16.mxu1 %v2628_v14 }
 0x103   :  { %2084 = vmatpush3.bf16.msra.mxu0 %v2081_v54  ;;  %v2150_v54 = vpack.c.bf16 %v557_v53, %v556_v52  ;;  %v526_v23 = vmul.f32 %v525_v18, %v2988_v22  ;;  %v728_v22 = vld [vmem:[#allocation10 + $0x20] sm:$0xff]  ;;  %v733_v52 = vld [vmem:[#allocation10 + $0x48] sm:$0xff] }
 0x104   :  { %2086 = vmatprep.subr.bf16.mxu0 %v2085_v57 }
 0x105   :  { %2121 = vmatpush3.bf16.msra.mxu1 %v2120_v21 }
 0x106   :  { %2122 = vmatprep.subr.bf16.mxu1 %v2628_v14 }
 0x107   :  { %2088 = vmatpush3.bf16.msra.mxu0 %v2085_v57  ;;  %v2129_v57 = vpack.c.bf16 %v543_v56, %v542_v55  ;;  %v749_v55 = vld [vmem:[#allocation12 + $0x48] sm:$0xff] }
 0x108   :  { %2090 = vmatprep.subr.bf16.mxu0 %v2089_v60 }
 0x109   :  { %2124 = vmatpush3.bf16.msra.mxu1 %v2123_v25  ;;  %v724_v25 = vld [vmem:[#allocation10] sm:$0xff] }
 0x10a   :  { %2125 = vmatprep.subr.bf16.mxu1 %v2628_v14 }
 0x10b   :  { %2092 = vmatpush3.bf16.msra.mxu0 %v2089_v60  ;;  %v2153_v60 = vpack.c.bf16 %v559_v59, %v558_v58  ;;  %v735_v58 = vld [vmem:[#allocation10 + $0x58] sm:$0xff] }
 0x10c   :  { %2094 = vmatprep.subr.bf16.mxu0 %v2093_v63 }
 0x10d   :  { %2127 = vmatpush3.bf16.msra.mxu1 %v2126_v28  ;;  %v740_v28 = vld [vmem:[#allocation12] sm:$0xff] }
 0x10e   :  { %2128 = vmatprep.subr.bf16.mxu1 %v2628_v14 }
 0x10f   :  { %2096 = vmatpush3.bf16.msra.mxu0 %v2093_v63  ;;  %v2132_v63 = vpack.c.bf16 %v545_v62, %v544_v61  ;;  %v751_v61 = vld [vmem:[#allocation12 + $0x58] sm:$0xff]  ;;  %v520_v62 = vld [vmem:[%s3209_s7] sm:$0xff] }
 0x110   :  { %2098 = vmatprep.subr.bf16.mxu0 %v2097_v2 }
 0x111   :  { %2130 = vmatpush3.bf16.msra.mxu1 %v2129_v57  ;;  %v734_v57 = vld [vmem:[#allocation10 + $0x50] sm:$0xff] }
 0x112   :  { %2131 = vmatprep.subr.bf16.mxu1 %v2628_v14 }
 0x113   :  { %2100 = vmatpush3.bf16.msra.mxu0 %v2097_v2  ;;  %v2156_v2 = vpack.c.bf16 %v561_v1, %v560_v0  ;;  %v2177_v0 = vpack.c.bf16 %v735_v58, %v734_v57  ;;  %v736_v1 = vld [vmem:[#allocation10 + $0x60] sm:$0xff] }
 0x114   :  { %2102 = vmatprep.subr.bf16.mxu0 %v2101_v5  ;;  %v1067_v58 = vld [vmem:[#allocation15 + $0x40] sm:$0xff] }
 0x115   :  { %2133 = vmatpush3.bf16.msra.mxu1 %v2132_v63  ;;  %v523_v63 = vld [vmem:[%s3210_s27] sm:$0xff] }
 0x116   :  { %2134 = vmatprep.subr.bf16.mxu1 %v2628_v14 }
 0x117   :  { %2104 = vmatpush3.bf16.msra.mxu0 %v2101_v5  ;;  %v2135_v5 = vpack.c.bf16 %v547_v4, %v546_v3 }
 0x118   :  { %2106 = vmatprep.subr.bf16.mxu0 %v2105_v8 }
 0x119   :  { %2136 = vmatpush3.bf16.msra.mxu1 %v2135_v5  ;;  %v529_v5 = vsub.f32 1.0, %v523_v63 }
 0x11a   :  { %2161 = vmatprep.subr.bf16.mxu1 %v2628_v14 }
 0x11b   :  { %2108 = vmatpush3.bf16.msra.mxu0 %v2105_v8  ;;  %v2159_v8 = vpack.c.bf16 %v563_v7, %v562_v6  ;;  %v752_v6 = vld [vmem:[#allocation12 + $0x60] sm:$0xff]  ;;  %v753_v7 = vld [vmem:[#allocation12 + $0x68] sm:$0xff] }
 0x11c   :  { %2110 = vmatprep.subr.bf16.mxu0 %v2109_v11 }
 0x11f   :  { %2112 = vmatpush3.bf16.msra.mxu0 %v2109_v11  ;;  %v512_v11 = vld [vmem:[%s3206_s25] sm:$0xff] }
 0x120   :  { %2137 = vmatprep.subr.bf16.mxu0 %v2628_v14 }
 0x1cf   :  { %v1666_v29 = vpop.f32.mrb[0].mxu1 }
 0x1d0   :  { %v432_v30 = vmax.f32 %v1666_v29, 1e-24  ;;  %v422_v31 = vpop.f32.mrb[1].mxu1  ;;  %v741_v29 = vld [vmem:[#allocation12 + $0x8] sm:$0xff] }
 0x1d1   :  { %v431_v32 = vmax.f32 %v422_v31, 1e-24 }
 0x1d2   :  { %2347 = vrsqrt.f32 %v432_v30  ;;  %v2162_v30 = vpack.c.bf16 %v725_v26, %v724_v25  ;;  %v759_v26 = vld [vmem:[#allocation13 + $0x18] sm:$0xff] }
 0x1d3   :  { %2349 = vrsqrt.f32 %v431_v32  ;;  %v726_v32 = vld [vmem:[#allocation10 + $0x10] sm:$0xff] }
 0x1d5   :  { %v1631_v33 = vpop.f32.mrb[0].mxu0 }
 0x1d6   :  { %v345_v34 = vpop.f32.mrb[1].mxu0 }
 0x1dc   :  { %v2348_v37 = vpop.eup %2347 }
 0x1dd   :  { %v2350_v38 = vpop.eup %2349  ;;  %v436_v39 = vmul.f32 %v2348_v37, %v1631_v33  ;;  %v727_v33 = vld [vmem:[#allocation10 + $0x18] sm:$0xff] }
 0x1de   :  { %v435_v40 = vmul.f32 %v2350_v38, %v345_v34  ;;  %v2186_v34 = vpack.c.bf16 %v741_v29, %v740_v28  ;;  %v743_v37 = vld [vmem:[#allocation12 + $0x18] sm:$0xff]  ;;  %v2165_v38 = vpack.c.bf16 %v727_v33, %v726_v32  ;;  %v760_v28 = vld [vmem:[#allocation13 + $0x20] sm:$0xff]  ;;  %v761_v29 = vld [vmem:[#allocation13 + $0x28] sm:$0xff] }
 0x1df   :  { %v763_v32 = vld [vmem:[#allocation13 + $0x38] sm:$0xff] }
 0x1e0   :  { %1699 = vmatprep.mubr.f32.mxu0 %v435_v40  ;;  %v2189_v40 = vpack.c.bf16 %v743_v37, %v742_v36  ;;  %v766_v37 = vld [vmem:[#allocation13 + $0x50] sm:$0xff] }
 0x1e1   :  { %1700 = vmatmul.mubr.f32.vlgmr.msra.gmra.mrb[2].mxu0 %v436_v39  ;;  %v729_v39 = vld [vmem:[#allocation10 + $0x28] sm:$0xff] }
 0x1e2   :  { %2139 = vmatpush3.bf16.msra.mxu0 %v2138_v41  ;;  %1769 = vmatprep.mubr.msk.f32.mxu0 %vm2629_vm0, %v2630_v9  ;;  %v744_v41 = vld [vmem:[#allocation12 + $0x20] sm:$0xff]  ;;  %v2168_v43 = vpack.c.bf16 %v729_v39, %v728_v22 }
 0x1e3   :  { %2140 = vmatprep.subr.bf16.mxu0 %v2628_v14  ;;  %v2192_v46 = vpack.c.bf16 %v745_v42, %v744_v41  ;;  %v768_v39 = vld [vmem:[#allocation13 + $0x60] sm:$0xff]  ;;  %v770_v42 = vld [vmem:[#allocation13 + $0x70] sm:$0xff] }
 0x1e6   :  { %2142 = vmatpush3.bf16.msra.mxu0 %v2141_v44  ;;  %v730_v44 = vld [vmem:[#allocation10 + $0x30] sm:$0xff] }
 0x1e7   :  { %2143 = vmatprep.subr.bf16.mxu0 %v2628_v14  ;;  %v2171_v49 = vpack.c.bf16 %v731_v45, %v730_v44  ;;  %v1059_v45 = vld [vmem:[#allocation15] sm:$0xff] }
 0x1ea   :  { %2145 = vmatpush3.bf16.msra.mxu0 %v2144_v47  ;;  %v746_v47 = vld [vmem:[#allocation12 + $0x30] sm:$0xff] }
 0x1eb   :  { %2146 = vmatprep.subr.bf16.mxu0 %v2628_v14  ;;  %v2195_v53 = vpack.c.bf16 %v747_v48, %v746_v47  ;;  %v1061_v47 = vld [vmem:[#allocation15 + $0x10] sm:$0xff] }
 0x1ee   :  { %2148 = vmatpush3.bf16.msra.mxu0 %v2147_v51  ;;  %v732_v51 = vld [vmem:[#allocation10 + $0x40] sm:$0xff] }
 0x1ef   :  { %2149 = vmatprep.subr.bf16.mxu0 %v2628_v14  ;;  %v2174_v56 = vpack.c.bf16 %v733_v52, %v732_v51  ;;  %v1063_v52 = vld [vmem:[#allocation15 + $0x20] sm:$0xff] }
 0x1f2   :  { %2151 = vmatpush3.bf16.msra.mxu0 %v2150_v54  ;;  %v748_v54 = vld [vmem:[#allocation12 + $0x40] sm:$0xff] }
 0x1f3   :  { %2152 = vmatprep.subr.bf16.mxu0 %v2628_v14  ;;  %v2198_v59 = vpack.c.bf16 %v749_v55, %v748_v54  ;;  %v1065_v55 = vld [vmem:[#allocation15 + $0x30] sm:$0xff] }
 0x1f6   :  { %2154 = vmatpush3.bf16.msra.mxu0 %v2153_v60  ;;  %v750_v60 = vld [vmem:[#allocation12 + $0x50] sm:$0xff] }
 0x1f7   :  { %2155 = vmatprep.subr.bf16.mxu0 %v2628_v14  ;;  %v2201_v3 = vpack.c.bf16 %v751_v61, %v750_v60  ;;  %v1069_v61 = vld [vmem:[#allocation15 + $0x50] sm:$0xff] }
 0x1fa   :  { %2157 = vmatpush3.bf16.msra.mxu0 %v2156_v2  ;;  %v737_v2 = vld [vmem:[#allocation10 + $0x68] sm:$0xff] }
 0x1fb   :  { %2158 = vmatprep.subr.bf16.mxu0 %v2628_v14 }
 0x1fe   :  { %2160 = vmatpush3.bf16.msra.mxu0 %v2159_v8  ;;  %v2180_v8 = vpack.c.bf16 %v737_v2, %v736_v1  ;;  %v1072_v1 = vld [vmem:[#allocation15 + $0x68] sm:$0xff] }
 0x1ff   :  { %2185 = vmatprep.subr.bf16.mxu0 %v2628_v14 }
 0x2b4   :  { %v1701_v12 = vpop.f32.mrb[2].mxu0 }
 0x2b5   :  { %v515_v15 = vmul.f32 %v1701_v12, %v514_v10  ;;  %v503_v16 = vpop.f32.mrb[3].mxu0  ;;  %v738_v10 = vld [vmem:[#allocation10 + $0x70] sm:$0xff]  ;;  %v2204_v12 = vpack.c.bf16 %v753_v7, %v752_v6 }
 0x2b6   :  { %v513_v17 = vmul.f32 %v512_v11, %v503_v16  ;;  %v739_v11 = vld [vmem:[#allocation10 + $0x78] sm:$0xff] }
 0x2b7   :  { %v755_v16 = vld [vmem:[#allocation12 + $0x78] sm:$0xff]  ;;  %v2183_v18 = vpack.c.bf16 %v739_v11, %v738_v10 }
 0x2b8   :  { %v516_v19 = vadd.f32 %v515_v15, %v513_v17  ;;  %v754_v15 = vld [vmem:[#allocation12 + $0x70] sm:$0xff]  ;;  %v530_v17 = vmul.f32 %v529_v5, %v3020_v50  ;;  %v756_v50 = vld [vmem:[#allocation13] sm:$0xff] }
 0x2ba   :  { %v3059_v21 = vmul.f32 0.01, %v516_v19  ;;  %v2207_v19 = vpack.c.bf16 %v755_v16, %v754_v15 }
 0x2bc   :  { %v519_v24 = vadd.f32 %v3059_v21, %v517_v20  ;;  %v521_v4 = vadd.f32 %v520_v62, %v3059_v21  ;;  %v1070_v62 = vld [vmem:[#allocation15 + $0x58] sm:$0xff] }
 0x2be   :  { %v524_v27 = vmul.f32 %v522_v13, %v519_v24  ;;  %v528_v13 = vmul.f32 %v523_v63, %v521_v4  ;;  %v758_v24 = vld [vmem:[#allocation13 + $0x10] sm:$0xff]  ;;  %v2273_v63 = vpack.c.bf16 %v1070_v62, %v1069_v61  ;;  %v1160_v61 = vld [vmem:[#allocation16 + $0x38] sm:$0xff] }
 0x2c0   :  { %v527_v31 = vadd.f32 %v526_v23, %v524_v27  ;;  %v531_v20 = vadd.f32 %v530_v17, %v528_v13  ;;  %v757_v23 = vld [vmem:[#allocation13 + $0x8] sm:$0xff]  ;;  %v2213_v27 = vpack.c.bf16 %v759_v26, %v758_v24  ;;  %v564_v17 = vld [vmem:[#allocation9] sm:$0xff] }
 0x2c1   :  { %v2210_v25 = vpack.c.bf16 %v757_v23, %v756_v50  ;;  %v566_v50 = vld [vmem:[#allocation9 + $0x10] sm:$0xff]  ;;  %v567_v23 = vld [vmem:[#allocation9 + $0x18] sm:$0xff]  ;;  %v569_v26 = vld [vmem:[#allocation9 + $0x28] sm:$0xff] }
 0x2c2   :  { %1735 = vmatmul.mubr.f32.vlgmr.msra.gmra.mrb[2].mxu1 %v527_v31  ;;  %v650_v35 = vmul.f32 %v527_v31, %v527_v31  ;;  %v842_v21 = vmul.f32 %v531_v20, %v531_v20  ;;  %v762_v31 = vld [vmem:[#allocation13 + $0x30] sm:$0xff]  ;;  %v2237_v24 = vpack.c.bf16 %v567_v23, %v566_v50  ;;  %v1281_v50 = vld [vmem:[#allocation18] sm:$0xff]  ;;  %v1282_v23 = vld [vmem:[#allocation18 + $0x8] sm:$0xff] }
 0x2c3   :  { %2163 = vmatpush3.bf16.msra.mxu1 %v2162_v30  ;;  %1804 = vmatprep.mubr.msk.f32.mxu1 %vm2629_vm0, %v2630_v9  ;;  %v2216_v30 = vpack.c.bf16 %v761_v29, %v760_v28  ;;  %v2219_v33 = vpack.c.bf16 %v763_v32, %v762_v31  ;;  %v570_v28 = vld [vmem:[#allocation9 + $0x30] sm:$0xff]  ;;  %v571_v29 = vld [vmem:[#allocation9 + $0x38] sm:$0xff]  ;;  %v572_v31 = vld [vmem:[#allocation9 + $0x40] sm:$0xff] }
 0x2c4   :  { %1770 = vmatmul.mubr.f32.vlgmr.msra.gmra.mrb[4].mxu0 %v650_v35  ;;  %2164 = vmatprep.subr.bf16.mxu1 %v2628_v14  ;;  %v765_v35 = vld [vmem:[#allocation13 + $0x48] sm:$0xff] }
 0x2c5   :  { %2187 = vmatpush3.bf16.msra.mxu0 %v2186_v34  ;;  %1839 = vmatprep.mubr.msk.f32.mxu0 %vm2629_vm0, %v2630_v9  ;;  %v764_v34 = vld [vmem:[#allocation13 + $0x40] sm:$0xff]  ;;  %v573_v32 = vld [vmem:[#allocation9 + $0x48] sm:$0xff] }
 0x2c6   :  { %2188 = vmatprep.subr.bf16.mxu0 %v2628_v14  ;;  %v2222_v36 = vpack.c.bf16 %v765_v35, %v764_v34  ;;  %v574_v34 = vld [vmem:[#allocation9 + $0x50] sm:$0xff]  ;;  %v575_v35 = vld [vmem:[#allocation9 + $0x58] sm:$0xff] }
 0x2c7   :  { %2166 = vmatpush3.bf16.msra.mxu1 %v2165_v38  ;;  %v767_v38 = vld [vmem:[#allocation13 + $0x58] sm:$0xff] }
 0x2c8   :  { %2167 = vmatprep.subr.bf16.mxu1 %v2628_v14  ;;  %v2225_v22 = vpack.c.bf16 %v767_v38, %v766_v37  ;;  %v576_v37 = vld [vmem:[#allocation9 + $0x60] sm:$0xff]  ;;  %v577_v38 = vld [vmem:[#allocation9 + $0x68] sm:$0xff] }
 0x2c9   :  { %2190 = vmatpush3.bf16.msra.mxu0 %v2189_v40  ;;  %v769_v40 = vld [vmem:[#allocation13 + $0x68] sm:$0xff] }
 0x2ca   :  { %2191 = vmatprep.subr.bf16.mxu0 %v2628_v14  ;;  %v2228_v41 = vpack.c.bf16 %v769_v40, %v768_v39  ;;  %v578_v39 = vld [vmem:[#allocation9 + $0x70] sm:$0xff]  ;;  %v579_v40 = vld [vmem:[#allocation9 + $0x78] sm:$0xff] }
 0x2cb   :  { %2169 = vmatpush3.bf16.msra.mxu1 %v2168_v43  ;;  %v771_v43 = vld [vmem:[#allocation13 + $0x78] sm:$0xff] }
 0x2cc   :  { %2170 = vmatprep.subr.bf16.mxu1 %v2628_v14  ;;  %v2231_v44 = vpack.c.bf16 %v771_v43, %v770_v42  ;;  %v1073_v42 = vld [vmem:[#allocation15 + $0x70] sm:$0xff]  ;;  %v1074_v43 = vld [vmem:[#allocation15 + $0x78] sm:$0xff] }
 0x2cd   :  { %2193 = vmatpush3.bf16.msra.mxu0 %v2192_v46  ;;  %v1060_v46 = vld [vmem:[#allocation15 + $0x8] sm:$0xff] }
 0x2ce   :  { %2194 = vmatprep.subr.bf16.mxu0 %v2628_v14  ;;  %v2258_v48 = vpack.c.bf16 %v1060_v46, %v1059_v45  ;;  %v1153_v45 = vld [vmem:[#allocation16] sm:$0xff]  ;;  %v1154_v46 = vld [vmem:[#allocation16 + $0x8] sm:$0xff] }
 0x2cf   :  { %2172 = vmatpush3.bf16.msra.mxu1 %v2171_v49  ;;  %v1062_v49 = vld [vmem:[#allocation15 + $0x18] sm:$0xff] }
 0x2d0   :  { %2173 = vmatprep.subr.bf16.mxu1 %v2628_v14  ;;  %v2261_v51 = vpack.c.bf16 %v1062_v49, %v1061_v47 }
 0x2d1   :  { %2196 = vmatpush3.bf16.msra.mxu0 %v2195_v53  ;;  %v1064_v53 = vld [vmem:[#allocation15 + $0x28] sm:$0xff] }
 0x2d2   :  { %2197 = vmatprep.subr.bf16.mxu0 %v2628_v14  ;;  %v2264_v54 = vpack.c.bf16 %v1064_v53, %v1063_v52  ;;  %v2282_v52 = vpack.c.bf16 %v1154_v46, %v1153_v45 }
 0x2d3   :  { %2175 = vmatpush3.bf16.msra.mxu1 %v2174_v56  ;;  %v1066_v56 = vld [vmem:[#allocation15 + $0x38] sm:$0xff] }
 0x2d4   :  { %2176 = vmatprep.subr.bf16.mxu1 %v2628_v14  ;;  %v2267_v57 = vpack.c.bf16 %v1066_v56, %v1065_v55  ;;  %v1156_v55 = vld [vmem:[#allocation16 + $0x18] sm:$0xff] }
 0x2d5   :  { %2199 = vmatpush3.bf16.msra.mxu0 %v2198_v59  ;;  %v1068_v59 = vld [vmem:[#allocation15 + $0x48] sm:$0xff] }
 0x2d6   :  { %2200 = vmatprep.subr.bf16.mxu0 %v2628_v14  ;;  %v2270_v60 = vpack.c.bf16 %v1068_v59, %v1067_v58  ;;  %v1158_v58 = vld [vmem:[#allocation16 + $0x28] sm:$0xff] }
 0x2d7   :  { %2178 = vmatpush3.bf16.msra.mxu1 %v2177_v0  ;;  %v1071_v0 = vld [vmem:[#allocation15 + $0x60] sm:$0xff] }
 0x2d8   :  { %2179 = vmatprep.subr.bf16.mxu1 %v2628_v14  ;;  %v2276_v2 = vpack.c.bf16 %v1072_v1, %v1071_v0  ;;  %v1162_v0 = vld [vmem:[#allocation16 + $0x48] sm:$0xff] }
 0x2d9   :  { %2202 = vmatpush3.bf16.msra.mxu0 %v2201_v3 }
 0x2da   :  { %2203 = vmatprep.subr.bf16.mxu0 %v2628_v14 }
 0x2db   :  { %2181 = vmatpush3.bf16.msra.mxu1 %v2180_v8 }
 0x2dc   :  { %2182 = vmatprep.subr.bf16.mxu1 %v2628_v14 }
 0x2dd   :  { %2205 = vmatpush3.bf16.msra.mxu0 %v2204_v12 }
 0x2de   :  { %2206 = vmatprep.subr.bf16.mxu0 %v2628_v14 }
 0x2df   :  { %2184 = vmatpush3.bf16.msra.mxu1 %v2183_v18  ;;  %v565_v18 = vld [vmem:[#allocation9 + $0x8] sm:$0xff] }
 0x2e0   :  { %2209 = vmatprep.subr.bf16.mxu1 %v2628_v14 }
 0x2e1   :  { %2208 = vmatpush3.bf16.msra.mxu0 %v2207_v19 }
 0x2e2   :  { %1805 = vmatmul.mubr.f32.vlgmr.msra.gmra.mrb[4].mxu1 %v531_v20  ;;  %2257 = vmatprep.subr.bf16.mxu0 %v2628_v14  ;;  %v2234_v20 = vpack.c.bf16 %v565_v18, %v564_v17  ;;  %v1386_v17 = vld [vmem:[%s3180_s20] ss:$0 sm:$0xff] }
 0x2e3   :  { %1874 = vmatprep.mubr.msk.f32.mxu1 %vm2629_vm0, %v2630_v9  ;;  %2211 = vmatpush3.bf16.msra.mxu1 %v2210_v25  ;;  %v568_v25 = vld [vmem:[#allocation9 + $0x20] sm:$0xff] }
 0x2e4   :  { %1840 = vmatmul.mubr.f32.vlgmr.msra.gmra.mrb[6].mxu0 %v842_v21  ;;  %2212 = vmatprep.subr.bf16.mxu1 %v2628_v14 }
 0x2e5   :  { %1944 = vmatprep.mubr.msk.f32.mxu0 %vm2629_vm0, %v2630_v9  ;;  %2259 = vmatpush3.bf16.msra.mxu0 %v2258_v48  ;;  %v1056_v48 = vld [vmem:[%s3176_s16] sm:$0xff] }
 0x2e6   :  { %2260 = vmatprep.subr.bf16.mxu0 %v2628_v14 }
 0x2e7   :  { %2214 = vmatpush3.bf16.msra.mxu1 %v2213_v27  ;;  %v2240_v27 = vpack.c.bf16 %v569_v26, %v568_v25  ;;  %v1283_v25 = vld [vmem:[#allocation18 + $0x10] sm:$0xff]  ;;  %v1284_v26 = vld [vmem:[#allocation18 + $0x18] sm:$0xff] }
 0x2e8   :  { %2215 = vmatprep.subr.bf16.mxu1 %v2628_v14 }
 0x2e9   :  { %2262 = vmatpush3.bf16.msra.mxu0 %v2261_v51 }
 0x2ea   :  { %2263 = vmatprep.subr.bf16.mxu0 %v2628_v14 }
 0x2eb   :  { %2217 = vmatpush3.bf16.msra.mxu1 %v2216_v30  ;;  %v2243_v30 = vpack.c.bf16 %v571_v29, %v570_v28  ;;  %v1285_v28 = vld [vmem:[#allocation18 + $0x20] sm:$0xff]  ;;  %v1286_v29 = vld [vmem:[#allocation18 + $0x28] sm:$0xff] }
 0x2ec   :  { %2218 = vmatprep.subr.bf16.mxu1 %v2628_v14 }
 0x2ed   :  { %2265 = vmatpush3.bf16.msra.mxu0 %v2264_v54  ;;  %v1155_v54 = vld [vmem:[#allocation16 + $0x10] sm:$0xff] }
 0x2ee   :  { %2266 = vmatprep.subr.bf16.mxu0 %v2628_v14  ;;  %v2285_v56 = vpack.c.bf16 %v1156_v55, %v1155_v54 }
 0x2ef   :  { %2220 = vmatpush3.bf16.msra.mxu1 %v2219_v33  ;;  %v2246_v33 = vpack.c.bf16 %v573_v32, %v572_v31  ;;  %v1287_v31 = vld [vmem:[#allocation18 + $0x30] sm:$0xff]  ;;  %v1288_v32 = vld [vmem:[#allocation18 + $0x38] sm:$0xff] }
 0x2f0   :  { %2221 = vmatprep.subr.bf16.mxu1 %v2628_v14 }
 0x2f1   :  { %2268 = vmatpush3.bf16.msra.mxu0 %v2267_v57  ;;  %v1157_v57 = vld [vmem:[#allocation16 + $0x20] sm:$0xff] }
 0x2f2   :  { %2269 = vmatprep.subr.bf16.mxu0 %v2628_v14  ;;  %v2288_v59 = vpack.c.bf16 %v1158_v58, %v1157_v57 }
 0x2f3   :  { %2223 = vmatpush3.bf16.msra.mxu1 %v2222_v36  ;;  %v2249_v36 = vpack.c.bf16 %v575_v35, %v574_v34  ;;  %v1289_v34 = vld [vmem:[#allocation18 + $0x40] sm:$0xff]  ;;  %v1290_v35 = vld [vmem:[#allocation18 + $0x48] sm:$0xff] }
 0x2f4   :  { %2224 = vmatprep.subr.bf16.mxu1 %v2628_v14 }
 0x2f5   :  { %2271 = vmatpush3.bf16.msra.mxu0 %v2270_v60  ;;  %v1159_v60 = vld [vmem:[#allocation16 + $0x30] sm:$0xff] }
 0x2f6   :  { %2272 = vmatprep.subr.bf16.mxu0 %v2628_v14  ;;  %v2291_v62 = vpack.c.bf16 %v1160_v61, %v1159_v60 }
 0x2f7   :  { %2226 = vmatpush3.bf16.msra.mxu1 %v2225_v22  ;;  %v2252_v22 = vpack.c.bf16 %v577_v38, %v576_v37  ;;  %v1291_v37 = vld [vmem:[#allocation18 + $0x50] sm:$0xff]  ;;  %v1292_v38 = vld [vmem:[#allocation18 + $0x58] sm:$0xff] }
 0x2f8   :  { %2227 = vmatprep.subr.bf16.mxu1 %v2628_v14 }
 0x2f9   :  { %2274 = vmatpush3.bf16.msra.mxu0 %v2273_v63  ;;  %v1161_v63 = vld [vmem:[#allocation16 + $0x40] sm:$0xff] }
 0x2fa   :  { %2275 = vmatprep.subr.bf16.mxu0 %v2628_v14  ;;  %v2294_v1 = vpack.c.bf16 %v1162_v0, %v1161_v63 }
 0x2fb   :  { %2229 = vmatpush3.bf16.msra.mxu1 %v2228_v41  ;;  %v2255_v41 = vpack.c.bf16 %v579_v40, %v578_v39  ;;  %v1293_v39 = vld [vmem:[#allocation18 + $0x60] sm:$0xff]  ;;  %v1294_v40 = vld [vmem:[#allocation18 + $0x68] sm:$0xff] }
 0x2fc   :  { %2230 = vmatprep.subr.bf16.mxu1 %v2628_v14 }
 0x2fd   :  { %2277 = vmatpush3.bf16.msra.mxu0 %v2276_v2  ;;  %v1164_v2 = vld [vmem:[#allocation16 + $0x58] sm:$0xff] }
 0x2fe   :  { %2278 = vmatprep.subr.bf16.mxu0 %v2628_v14 }
 0x2ff   :  { %2232 = vmatpush3.bf16.msra.mxu1 %v2231_v44  ;;  %v2279_v44 = vpack.c.bf16 %v1074_v43, %v1073_v42  ;;  %v1295_v42 = vld [vmem:[#allocation18 + $0x70] sm:$0xff]  ;;  %v1296_v43 = vld [vmem:[#allocation18 + $0x78] sm:$0xff] }
 0x300   :  { %2233 = vmatprep.subr.bf16.mxu1 %v2628_v14 }
 0x301   :  { %2280 = vmatpush3.bf16.msra.mxu0 %v2279_v44  ;;  %v2327_v44 = vpack.c.bf16 %v1296_v43, %v1295_v42 }
 0x302   :  { %2281 = vmatprep.subr.bf16.mxu0 %v2628_v14 }
 0x395   :  { %v646_v3 = vpop.f32.mrb[2].mxu1 }
 0x396   :  { %v1736_v4 = vpop.f32.mrb[3].mxu1 }
 0x397   :  { %v717_v5 = vpop.f32.mrb[4].mxu0  ;;  %v1165_v4 = vld [vmem:[#allocation16 + $0x60] sm:$0xff] }
 0x398   :  { %v721_v6 = vmax.f32 %v717_v5, 1e-24  ;;  %v1771_v7 = vpop.f32.mrb[5].mxu0  ;;  %v1166_v5 = vld [vmem:[#allocation16 + $0x68] sm:$0xff] }
 0x399   :  { %v1167_v7 = vld [vmem:[#allocation16 + $0x70] sm:$0xff] }
 0x39a   :  { %2351 = vrsqrt.f32 %v721_v6  ;;  %v2300_v6 = vpack.c.bf16 %v1166_v5, %v1165_v4 }
 0x3a4   :  { %v2352_v8 = vpop.eup %2351 }
 0x3a5   :  { %v723_v10 = vmul.f32 %v2352_v8, %v646_v3  ;;  %v1168_v8 = vld [vmem:[#allocation16 + $0x78] sm:$0xff] }
 0x3b5   :  { %v838_v11 = vpop.f32.mrb[4].mxu1 }
 0x3b6   :  { %v1806_v12 = vpop.f32.mrb[5].mxu1 }
 0x3b7   :  { %v909_v13 = vpop.f32.mrb[6].mxu0 }
 0x3b8   :  { %v913_v15 = vmax.f32 %v909_v13, 1e-24  ;;  %v1841_v16 = vpop.f32.mrb[7].mxu0 }
 0x3ba   :  { %2353 = vrsqrt.f32 %v913_v15 }
 0x3c4   :  { %v2354_v19 = vpop.eup %2353 }
 0x3c5   :  { %v915_v21 = vmul.f32 %v2354_v19, %v838_v11  ;;  %v1385_v11 = vld [vmem:[%s3178_s18] ss:$0 sm:$0xff] }
 0x3c7   :  { %1875 = vmatmul.mubr.f32.vlgmr.msra.gmra.mrb[6].mxu1 %v915_v21 }
 0x3c8   :  { %2235 = vmatpush3.bf16.msra.mxu1 %v2234_v20  ;;  %1909 = vmatprep.mubr.msk.f32.mxu1 %vm2629_vm0, %v2630_v9 }
 0x3c9   :  { %2236 = vmatprep.subr.bf16.mxu1 %v2628_v14 }
 0x3cc   :  { %2238 = vmatpush3.bf16.msra.mxu1 %v2237_v24  ;;  %v2306_v24 = vpack.c.bf16 %v1282_v23, %v1281_v50 }
 0x3cd   :  { %2239 = vmatprep.subr.bf16.mxu1 %v2628_v14 }
 0x3d0   :  { %2241 = vmatpush3.bf16.msra.mxu1 %v2240_v27  ;;  %v2309_v27 = vpack.c.bf16 %v1284_v26, %v1283_v25 }
 0x3d1   :  { %2242 = vmatprep.subr.bf16.mxu1 %v2628_v14 }
 0x3d4   :  { %2244 = vmatpush3.bf16.msra.mxu1 %v2243_v30  ;;  %v2312_v30 = vpack.c.bf16 %v1286_v29, %v1285_v28 }
 0x3d5   :  { %2245 = vmatprep.subr.bf16.mxu1 %v2628_v14 }
 0x3d8   :  { %2247 = vmatpush3.bf16.msra.mxu1 %v2246_v33  ;;  %v2315_v33 = vpack.c.bf16 %v1288_v32, %v1287_v31 }
 0x3d9   :  { %2248 = vmatprep.subr.bf16.mxu1 %v2628_v14 }
 0x3dc   :  { %2250 = vmatpush3.bf16.msra.mxu1 %v2249_v36  ;;  %v2318_v36 = vpack.c.bf16 %v1290_v35, %v1289_v34 }
 0x3dd   :  { %2251 = vmatprep.subr.bf16.mxu1 %v2628_v14 }
 0x3e0   :  { %2253 = vmatpush3.bf16.msra.mxu1 %v2252_v22  ;;  %v2321_v22 = vpack.c.bf16 %v1292_v38, %v1291_v37 }
 0x3e1   :  { %2254 = vmatprep.subr.bf16.mxu1 %v2628_v14 }
 0x3e4   :  { %2256 = vmatpush3.bf16.msra.mxu1 %v2255_v41  ;;  %v2324_v41 = vpack.c.bf16 %v1294_v40, %v1293_v39 }
 0x3e5   :  { %2305 = vmatprep.subr.bf16.mxu1 %v2628_v14 }
 0x3e7   :  { %1910 = vmatmul.mubr.f32.vlgmr.msra.gmra.mrb[6].mxu1 %v723_v10  ;;  %v2303_v10 = vpack.c.bf16 %v1168_v8, %v1167_v7 }
 0x3e8   :  { %2014 = vmatprep.mubr.msk.f32.mxu1 %vm2629_vm0, %v2630_v9  ;;  %2307 = vmatpush3.bf16.msra.mxu1 %v2306_v24 }
 0x3e9   :  { %2308 = vmatprep.subr.bf16.mxu1 %v2628_v14 }
 0x3ec   :  { %2310 = vmatpush3.bf16.msra.mxu1 %v2309_v27 }
 0x3ed   :  { %2311 = vmatprep.subr.bf16.mxu1 %v2628_v14 }
 0x3f0   :  { %2313 = vmatpush3.bf16.msra.mxu1 %v2312_v30 }
 0x3f1   :  { %2314 = vmatprep.subr.bf16.mxu1 %v2628_v14 }
 0x3f4   :  { %2316 = vmatpush3.bf16.msra.mxu1 %v2315_v33 }
 0x3f5   :  { %2317 = vmatprep.subr.bf16.mxu1 %v2628_v14 }
 0x3f8   :  { %2319 = vmatpush3.bf16.msra.mxu1 %v2318_v36 }
 0x3f9   :  { %2320 = vmatprep.subr.bf16.mxu1 %v2628_v14 }
 0x3fc   :  { %2322 = vmatpush3.bf16.msra.mxu1 %v2321_v22 }
 0x3fd   :  { %2323 = vmatprep.subr.bf16.mxu1 %v2628_v14 }
 0x400   :  { %2325 = vmatpush3.bf16.msra.mxu1 %v2324_v41 }
 0x401   :  { %2326 = vmatprep.subr.bf16.mxu1 %v2628_v14 }
 0x404   :  { %2328 = vmatpush3.bf16.msra.mxu1 %v2327_v44 }
 0x4ba   :  { %v1052_v47 = vpop.f32.mrb[6].mxu1 }
 0x4bb   :  { %v1057_v49 = vmul.f32 0.01, %v1052_v47  ;;  %v1911_v51 = vpop.f32.mrb[7].mxu1 }
 0x4bd   :  { %v1058_v53 = vadd.f32 %v1057_v49, %v1056_v48 }
 0x4bf   :  { %1945 = vmatmul.mubr.f32.vlgmr.msra.gmra.mrb[8].mxu0 %v1058_v53 }
 0x4c0   :  { %2283 = vmatpush3.bf16.msra.mxu0 %v2282_v52  ;;  %1979 = vmatprep.mubr.msk.f32.mxu0 %vm2629_vm0, %v2630_v9  ;;  %v1163_v9 = vld [vmem:[#allocation16 + $0x50] sm:$0xff] }
 0x4c1   :  { %2284 = vmatprep.subr.bf16.mxu0 %v2628_v14  ;;  %v2297_v3 = vpack.c.bf16 %v1164_v2, %v1163_v9 }
 0x4c4   :  { %2286 = vmatpush3.bf16.msra.mxu0 %v2285_v56  ;;  %v1387_v56 = vld [vmem:[%s3181_s21] ss:$0 sm:$0xff] }
 0x4c5   :  { %2287 = vmatprep.subr.bf16.mxu0 %v2628_v14 }
 0x4c8   :  { %2289 = vmatpush3.bf16.msra.mxu0 %v2288_v59 }
 0x4c9   :  { %2290 = vmatprep.subr.bf16.mxu0 %v2628_v14 }
 0x4cc   :  { %2292 = vmatpush3.bf16.msra.mxu0 %v2291_v62 }
 0x4cd   :  { %2293 = vmatprep.subr.bf16.mxu0 %v2628_v14 }
 0x4d0   :  { %2295 = vmatpush3.bf16.msra.mxu0 %v2294_v1  ;;  %v1389_v1 = vld [vmem:[%s3184_s24] ss:$0 sm:$0xff] }
 0x4d1   :  { %2296 = vmatprep.subr.bf16.mxu0 %v2628_v14 }
 0x4d4   :  { %2298 = vmatpush3.bf16.msra.mxu0 %v2297_v3 }
 0x4d5   :  { %2299 = vmatprep.subr.bf16.mxu0 %v2628_v14 }
 0x4d8   :  { %2301 = vmatpush3.bf16.msra.mxu0 %v2300_v6 }
 0x4d9   :  { %2302 = vmatprep.subr.bf16.mxu0 %v2628_v14  ;;  %v1388_v14 = vld [vmem:[%s3182_s22] ss:$0 sm:$0xff] }
 0x4dc   :  { %2304 = vmatpush3.bf16.msra.mxu0 %v2303_v10 }
 0x592   :  { %v1148_v12 = vpop.f32.mrb[8].mxu0 }
 0x593   :  { %v1149_v13 = vadd.f32 %v1385_v11, %v1148_v12  ;;  %v1946_v15 = vpop.f32.mrb[9].mxu0 }
 0x595   :  { %2355 = vtanh.f32 %v1149_v13 }
 0x59f   :  { %v2356_v16 = vpop.eup %2355 }
 0x5a0   :  { %1980 = vmatmul.mubr.f32.vlgmr.msra.gmra.mrb[10].mxu0 %v2356_v16 }
 0x673   :  { %v1242_v18 = vpop.f32.mrb[10].mxu0 }
 0x674   :  { %v1243_v19 = vadd.f32 %v1386_v17, %v1242_v18  ;;  %v1981_v20 = vpop.f32.mrb[11].mxu0 }
 0x676   :  { %1246 = vadd.xlane.f32.xlu0 %v1243_v19  ;;  %v1249_v21 = vmul.f32 %v1243_v19, %v1243_v19 }
 0x67a   :  { %1250 = vadd.xlane.f32.xlu0 %v1249_v21 }
 0x703   :  { %v1247_v45 = vpop.xlane.xlu0 %1246 }
 0x704   :  { %v1248_v46 = vmul.f32 0.015625, %v1247_v45 }
 0x706   :  { %v1253_v48 = vmul.f32 %v1248_v46, %v1248_v46  ;;  %v1256_v54 = vsub.f32 %v1243_v19, %v1248_v46 }
 0x707   :  { %v1251_v47 = vpop.xlane.xlu0 %1250 }
 0x708   :  { %v1252_v49 = vmul.f32 0.015625, %v1251_v47 }
 0x70a   :  { %v1254_v51 = vsub.f32 %v1252_v49, %v1253_v48 }
 0x70c   :  { %v1255_v52 = vmax.f32 %v1254_v51, 0.0 }
 0x70e   :  { %v1257_v53 = vadd.f32 1e-05, %v1255_v52 }
 0x710   :  { %2357 = vrsqrt.f32 %v1257_v53 }
 0x71a   :  { %v2358_v55 = vpop.eup %2357 }
 0x71b   :  { %v1259_v57 = vmul.f32 %v2358_v55, %v1256_v54 }
 0x71d   :  { %v1267_v58 = vmul.f32 %v1387_v56, %v1259_v57 }
 0x71f   :  { %v1275_v59 = vadd.f32 %v1388_v14, %v1267_v58 }
 0x721   :  { %v1277_v60 = vmul.f32 0.70710677, %v1275_v59  ;;  %v1276_v62 = vmul.f32 0.5, %v1275_v59 }
 0x723   :  { %2359 = verf.f32 %v1277_v60 }
 0x72d   :  { %v2360_v61 = vpop.eup %2359 }
 0x72e   :  { %v1279_v63 = vadd.f32 1.0, %v2360_v61 }
 0x730   :  { %v1280_v0 = vmul.f32 %v1279_v63, %v1276_v62 }
 0x732   :  { %2015 = vmatmul.mubr.f32.vlgmr.msra.gmra.mrb[8].mxu1 %v1280_v0 }
 0x805   :  { %v1370_v9 = vpop.f32.mrb[8].mxu1 }
 0x806   :  { %v1371_v2 = vadd.f32 %v1389_v1, %v1370_v9  ;;  %v2016_v3 = vpop.f32.mrb[9].mxu1 }
 0x808   :  { %1374 = vst [vmem:[%s3211_s26] sm:$0xff] %v1371_v2 }
 0x809   :  { %1379 = vsyncpa [#allocation3], 1 }
 0x80a   :  { %1380 = vsyncpa [#allocation5], 1 }
 0x80b   :  { %1381 = vsyncpa [#allocation8], 1 }
 0x80c   :  { %1382 = vsyncpa [#allocation11], 1 }
 0x80d   :  { %1383 = vsyncpa [#allocation14], 1 }
 0x80e   :  { %1384 = vsyncpa [#allocation17], 1 }

</bundles_post_ra>
